<compile_context>
chip_gen: v5e
topology: v5e:2x2
jax: 0.10.0
libtpu: 0.0.40
codegen_flags: <defaults>
</compile_context>

<pallas_src>
import functools

import jax
import jax.numpy as jnp
from jax.experimental import pallas as pl
from jax.experimental.pallas import tpu as pltpu


# ----------------------------------------------------------------------------
# small static helpers (trace-time Python ints)
# ----------------------------------------------------------------------------
def _round_up(x, m):
    return ((x + m - 1) // m) * m


def _choose_tile_h(ho, wo):
    """Largest divisor of ho (<=16) whose row tile (tile_h*wo) is 8-aligned,
    preferring >=2 row tiles so the grid pipelines / shards across TensorCores."""
    cands = [d for d in range(1, ho + 1) if ho % d == 0 and (d * wo) % 8 == 0]
    if not cands:
        return ho  # single full tile: block dim == full array dim, always legal
    multi = [d for d in cands if ho // d >= 2] or cands
    small = [d for d in multi if d <= 16] or multi
    return max(small)


# ----------------------------------------------------------------------------
# Fused depthwise(3x3, stride, pad=1) + BN + ReLU  ->  pointwise(1x1) + BN + ReLU
# ----------------------------------------------------------------------------
def _fused_block_kernel(x_ref, dw_w_ref, dw_b_ref, pw_w_ref, pw_b_ref, o_ref,
                        dw_out_ref, *, tile_h, wo, cin, stride):
    # x_ref    : (1, Hp, Wq, s*Cin)  whole padded image for batch n (W-phase folded)
    # dw_w_ref : (3, 3, Cin)         depthwise weights (BN scale pre-folded)
    # dw_b_ref : (1, Cin)            folded depthwise bias
    # pw_w_ref : (Cin, TILE_N)       pointwise weights (BN scale pre-folded)
    # pw_b_ref : (1, TILE_N)         folded pointwise bias
    # o_ref    : (1, tile_h*Wo, TILE_N)
    # dw_out_ref: VMEM scratch (tile_h*Wo, Cin), persists across the Cout-tile axis
    s = stride
    t = pl.program_id(1)
    j = pl.program_id(2)

    # ---- depthwise stage: run once per (n, row-tile), i.e. only at j == 0 ----
    @pl.when(j == 0)
    def _depthwise():
        bias = dw_b_ref[0].astype(jnp.float32)                      # (Cin,)
        row0 = t * (tile_h * s)
        for r in range(tile_h):                                     # static unroll
            acc = jnp.zeros((wo, cin), jnp.float32)                 # vreg-resident
            for kh in range(3):
                in_row = row0 + r * s + kh                          # leading-axis index
                for kw in range(3):
                    ph = kw % s          # W-stride phase -> lane block (128-aligned)
                    q = kw // s          # unit-stride offset along folded W axis
                    tap = x_ref[0, in_row, pl.ds(q, wo), pl.ds(ph * cin, cin)]
                    w = dw_w_ref[kh, kw, :].astype(jnp.float32)
                    acc = acc + tap.astype(jnp.float32) * w
            y = jnp.maximum(acc + bias, 0.0)
            dw_out_ref[r * wo:(r + 1) * wo, :] = y.astype(dw_out_ref.dtype)

    # ---- pointwise stage: 1x1 conv as a matmul over the row tile -------------
    a = dw_out_ref[...]                                   # (tile_h*Wo, Cin)
    y = jnp.dot(a, pw_w_ref[...], preferred_element_type=jnp.float32)
    y = y + pw_b_ref[0].astype(jnp.float32)
    o_ref[0] = jnp.maximum(y, 0.0).astype(o_ref.dtype)


def fused_block(x_nhwc, dw_w, dw_b, pw_w, pw_b, *, stride):
    # x_nhwc: (N, H, W, Cin) with Cin a multiple of 128 (lane-dense)
    # dw_w: (3, 3, Cin); dw_b: (Cin,); pw_w: (Cin, Cout); pw_b: (Cout,)
    N, H, W, Cin = x_nhwc.shape
    Cout = pw_w.shape[1]
    s = stride
    Ho = (H + 2 - 3) // s + 1
    Wo = (W + 2 - 3) // s + 1
    Hp, Wp = H + 2, W + 2
    Wq = -(-Wp // s)                                   # ceil(Wp / s)

    # spatial halo pad + make Wp a multiple of s, then fold the W-stride phase
    # into the lane dim (free row-major reshape): (N, Hp, Wq, s*Cin)
    x_pad = jnp.pad(x_nhwc, ((0, 0), (1, 1), (1, 1 + Wq * s - Wp), (0, 0)))
    x_pl = x_pad.reshape(N, Hp, Wq, s * Cin)

    tile_h = _choose_tile_h(Ho, Wo)
    tile_n = 256 if Cout % 256 == 0 else (128 if Cout % 128 == 0 else Cout)
    n_row = Ho // tile_h
    n_cout = Cout // tile_n
    M = Ho * Wo

    kernel = functools.partial(_fused_block_kernel,
                               tile_h=tile_h, wo=Wo, cin=Cin, stride=s)
    itemsize = jnp.dtype(x_nhwc.dtype).itemsize
    cost = pl.CostEstimate(
        flops=2 * 9 * N * M * Cin + 2 * N * M * Cin * Cout,
        transcendentals=0,
        bytes_accessed=int(x_pl.size) * itemsize
                       + int(pw_w.size) * jnp.dtype(pw_w.dtype).itemsize
                       + N * M * Cout * itemsize,
    )

    out = pl.pallas_call(
        kernel,
        out_shape=jax.ShapeDtypeStruct((N, M, Cout), x_nhwc.dtype),
        grid_spec=pltpu.PrefetchScalarGridSpec(
            num_scalar_prefetch=0,
            grid=(N, n_row, n_cout),
            in_specs=[
                # whole padded image stays VMEM-resident across (row, cout) axes
                pl.BlockSpec((1, Hp, Wq, s * Cin), lambda n, t, j: (n, 0, 0, 0)),
                pl.BlockSpec((3, 3, Cin), lambda n, t, j: (0, 0, 0)),
                pl.BlockSpec((1, Cin), lambda n, t, j: (0, 0)),
                pl.BlockSpec((Cin, tile_n), lambda n, t, j: (0, j)),
                pl.BlockSpec((1, tile_n), lambda n, t, j: (0, j)),
            ],
            out_specs=pl.BlockSpec((1, tile_h * Wo, tile_n),
                                   lambda n, t, j: (n, t, j)),
            scratch_shapes=[pltpu.VMEM((tile_h * Wo, Cin), x_nhwc.dtype)],
        ),
        compiler_params=pltpu.CompilerParams(
            # Cout-tile axis is "arbitrary": the DW scratch carries state across it.
            dimension_semantics=("parallel", "parallel", "arbitrary"),
            vmem_limit_bytes=32 * 1024 * 1024,
        ),
        cost_estimate=cost,
    )(x_pl, dw_w, dw_b.reshape(1, Cin), pw_w, pw_b.reshape(1, Cout))

    return out.reshape(N, Ho, Wo, Cout)


# ----------------------------------------------------------------------------
# BLOCK forward (NCHW in / NCHW out, like the PyTorch module)
# ----------------------------------------------------------------------------
def _block_forward_impl(x_nchw, params, *, stride):
    x = jnp.transpose(x_nchw, (0, 2, 3, 1))          # NCHW -> NHWC (fused under jit)
    N, H, W, Cin = x.shape
    Cout = params["pw_w"].shape[1]
    Cin_p = _round_up(Cin, 128)
    Cout_p = _round_up(Cout, 128)

    # TODO(synk): when this block is chained in a full network, keep activations
    # in padded NHWC between blocks and do transpose/pad/slice once at the
    # network boundary instead of per block.
    x = jnp.pad(x, ((0, 0), (0, 0), (0, 0), (0, Cin_p - Cin)))
    dw_w = jnp.pad(params["dw_w"], ((0, 0), (0, 0), (0, Cin_p - Cin)))
    dw_b = jnp.pad(params["dw_bias"], ((0, Cin_p - Cin),))
    pw_w = jnp.pad(params["pw_w"], ((0, Cin_p - Cin), (0, Cout_p - Cout)))
    pw_b = jnp.pad(params["pw_bias"], ((0, Cout_p - Cout),))

    # TODO(synk): for very small Cin (first MobileNet blocks) the 128-lane channel
    # padding does redundant depthwise work; an unpadded-Cin depthwise path would
    # avoid it at the cost of non-128-aligned lane slices.
    z = fused_block(x, dw_w, dw_b, pw_w, pw_b, stride=stride)   # (N, Ho, Wo, Cout_p)
    z = z[..., :Cout]
    return jnp.transpose(z, (0, 3, 1, 2))                        # NHWC -> NCHW


block_forward = jax.jit(_block_forward_impl, static_argnames=("stride",))


def make_params(key, in_channel, out_channel, dtype=jnp.float32, eps=1e-5):
    ks = jax.random.split(key, 8)
    # depthwise conv: PyTorch weight shape (C, 1, 3, 3), bias (C,)
    dw_w_torch = jax.random.normal(ks[0], (in_channel, 1, 3, 3), dtype) * 0.1
    dw_b = jax.random.normal(ks[1], (in_channel,), dtype) * 0.1
    dw_gamma = 1.0 + 0.1 * jax.random.normal(ks[2], (in_channel,), dtype)
    dw_beta = 0.1 * jax.random.normal(ks[3], (in_channel,), dtype)
    # pointwise conv: PyTorch weight shape (Cout, Cin, 1, 1), bias (Cout,)
    pw_w_torch = jax.random.normal(ks[4], (out_channel, in_channel, 1, 1), dtype) * 0.1
    pw_b = jax.random.normal(ks[5], (out_channel,), dtype) * 0.1
    pw_gamma = 1.0 + 0.1 * jax.random.normal(ks[6], (out_channel,), dtype)
    pw_beta = 0.1 * jax.random.normal(ks[7], (out_channel,), dtype)

    # inference BN (mean=0, var=1) folded: multiplicative scale into the conv
    # weights, additive part into the bias.
    dw_scale = dw_gamma / jnp.sqrt(1.0 + eps)
    dw_bias = dw_b * dw_scale + dw_beta
    pw_scale = pw_gamma / jnp.sqrt(1.0 + eps)
    pw_bias = pw_b * pw_scale + pw_beta

    return {
        # kernel layouts: depthwise (kh, kw, C), pointwise (Cin, Cout) — scale folded
        "dw_w": jnp.transpose(dw_w_torch[:, 0], (1, 2, 0)) * dw_scale,
        "dw_bias": dw_bias,
        "pw_w": jnp.transpose(pw_w_torch[:, :, 0, 0], (1, 0)) * pw_scale,
        "pw_bias": pw_bias,
        # originals kept only for the reference check
        "_dw_w_torch": dw_w_torch,
        "_dw_scale": dw_scale,
        "_pw_w_torch": pw_w_torch,
        "_pw_scale": pw_scale,
    }


def reference_forward(x_nchw, params, *, stride):
    # pure-JAX reference in NCHW, mirrors PyTorch semantics
    C = x_nchw.shape[1]
    y = jax.lax.conv_general_dilated(
        x_nchw, params["_dw_w_torch"], (stride, stride), ((1, 1), (1, 1)),
        feature_group_count=C,
        dimension_numbers=("NCHW", "OIHW", "NCHW"),
    )
    y = y * params["_dw_scale"][None, :, None, None] + params["dw_bias"][None, :, None, None]
    y = jnp.maximum(y, 0.0)
    z = jax.lax.conv_general_dilated(
        y, params["_pw_w_torch"], (1, 1), ((0, 0), (0, 0)),
        dimension_numbers=("NCHW", "OIHW", "NCHW"),
    )
    z = z * params["_pw_scale"][None, :, None, None] + params["pw_bias"][None, :, None, None]
    return jnp.maximum(z, 0.0)


if __name__ == "__main__":
    N, Cin, H, W = 2, 4, 16, 16
    Cout = 8
    stride = 2

    key = jax.random.PRNGKey(0)
    kx, kp = jax.random.split(key)
    x = jax.random.normal(kx, (N, Cin, H, W), jnp.float32)
    params = make_params(kp, Cin, Cout)

    out = block_forward(x, params, stride=stride)
    out = jax.block_until_ready(out)

    ref = reference_forward(x, params, stride=stride)
    assert out.shape == ref.shape == (N, Cout, H // stride, W // stride)
    assert jnp.allclose(out, ref, atol=1e-4, rtol=1e-4), "mismatch vs reference"

    # also exercise the stride=1 depthwise path once
    params1 = make_params(jax.random.PRNGKey(1), Cin, Cout)
    out1 = jax.block_until_ready(block_forward(x, params1, stride=1))
    ref1 = reference_forward(x, params1, stride=1)
    assert jnp.allclose(out1, ref1, atol=1e-4, rtol=1e-4), "mismatch (stride=1)"

    print("KERNEL_OK")
</pallas_src>

<mosaic_0001>
module attributes {stable_mosaic.version = 11 : i64} {
  func.func @_fused_block_kernel(%arg0: i32, %arg1: i32, %arg2: i32, %arg3: memref<1x18x9x256xf32, #tpu.memory_space<vmem>>, %arg4: memref<3x3x128xf32, #tpu.memory_space<vmem>>, %arg5: memref<1x128xf32, #tpu.memory_space<vmem>>, %arg6: memref<128x128xf32, #tpu.memory_space<vmem>>, %arg7: memref<1x128xf32, #tpu.memory_space<vmem>>, %arg8: memref<1x32x128xf32, #tpu.memory_space<vmem>>, %arg9: memref<32x128xf32, #tpu.memory_space<vmem>>) attributes {dimension_semantics = [#tpu.dimension_semantics<parallel>, #tpu.dimension_semantics<parallel>, #tpu.dimension_semantics<arbitrary>], iteration_bounds = array<i64: 2, 2, 1>, scalar_prefetch = 0 : i64, scratch_operands = 1 : i64, tpu.core_type = #tpu.core_type<tc>, window_params = [{transform_indices = @transform_0, window_bounds = array<i64: 1, 18, 9, 256>}, {pipeline_mode = #tpu.pipeline_mode<synchronous>, transform_indices = @transform_1, window_bounds = array<i64: 3, 3, 128>}, {pipeline_mode = #tpu.pipeline_mode<synchronous>, transform_indices = @transform_2, window_bounds = array<i64: 1, 128>}, {transform_indices = @transform_3, window_bounds = array<i64: 128, 128>}, {transform_indices = @transform_4, window_bounds = array<i64: 1, 128>}, {transform_indices = @transform_5, window_bounds = array<i64: 1, 32, 128>}]} {
    %c0_i32 = arith.constant 0 : i32
    %0 = arith.cmpi eq, %arg2, %c0_i32 : i32
    %1 = arith.extui %0 : i1 to i32
    %c0_i32_0 = arith.constant 0 : i32
    %2 = arith.cmpi ne, %1, %c0_i32_0 : i32
    scf.if %2 {
      %c0_10 = arith.constant 0 : index
      %c0_11 = arith.constant 0 : index
      %16 = vector.load %arg5[%c0_10, %c0_11] : memref<1x128xf32, #tpu.memory_space<vmem>>, vector<1x128xf32>
      %17 = vector.shape_cast %16 : vector<1x128xf32> to vector<128xf32>
      %c8_i32 = arith.constant 8 : i32
      %18 = arith.muli %arg1, %c8_i32 : i32
      %cst_12 = arith.constant 0.000000e+00 : f32
      %19 = vector.broadcast %cst_12 : f32 to vector<8x128xf32>
      %c0_i32_13 = arith.constant 0 : i32
      %20 = arith.addi %18, %c0_i32_13 : i32
      %c0_i32_14 = arith.constant 0 : i32
      %21 = arith.addi %20, %c0_i32_14 : i32
      %c0_15 = arith.constant 0 : index
      %22 = arith.index_cast %21 : i32 to index
      %c0_16 = arith.constant 0 : index
      %c0_17 = arith.constant 0 : index
      %23 = vector.load %arg3[%c0_15, %22, %c0_16, %c0_17] : memref<1x18x9x256xf32, #tpu.memory_space<vmem>>, vector<1x1x8x128xf32>
      %24 = vector.shape_cast %23 : vector<1x1x8x128xf32> to vector<8x128xf32>
      %c0_18 = arith.constant 0 : index
      %c0_19 = arith.constant 0 : index
      %c0_20 = arith.constant 0 : index
      %25 = vector.load %arg4[%c0_18, %c0_19, %c0_20] : memref<3x3x128xf32, #tpu.memory_space<vmem>>, vector<1x1x128xf32>
      %26 = vector.shape_cast %25 : vector<1x1x128xf32> to vector<128xf32>
      %27 = vector.shape_cast %26 : vector<128xf32> to vector<1x128xf32>
      %28 = vector.broadcast %27 : vector<1x128xf32> to vector<8x128xf32>
      %29 = arith.mulf %24, %28 : vector<8x128xf32>
      %30 = arith.addf %19, %29 : vector<8x128xf32>
      %c0_21 = arith.constant 0 : index
      %31 = arith.index_cast %21 : i32 to index
      %c0_22 = arith.constant 0 : index
      %c128 = arith.constant 128 : index
      %32 = vector.load %arg3[%c0_21, %31, %c0_22, %c128] : memref<1x18x9x256xf32, #tpu.memory_space<vmem>>, vector<1x1x8x128xf32>
      %33 = vector.shape_cast %32 : vector<1x1x8x128xf32> to vector<8x128xf32>
      %c0_23 = arith.constant 0 : index
      %c1 = arith.constant 1 : index
      %c0_24 = arith.constant 0 : index
      %34 = vector.load %arg4[%c0_23, %c1, %c0_24] : memref<3x3x128xf32, #tpu.memory_space<vmem>>, vector<1x1x128xf32>
      %35 = vector.shape_cast %34 : vector<1x1x128xf32> to vector<128xf32>
      %36 = vector.shape_cast %35 : vector<128xf32> to vector<1x128xf32>
      %37 = vector.broadcast %36 : vector<1x128xf32> to vector<8x128xf32>
      %38 = arith.mulf %33, %37 : vector<8x128xf32>
      %39 = arith.addf %30, %38 : vector<8x128xf32>
      %c0_25 = arith.constant 0 : index
      %40 = arith.index_cast %21 : i32 to index
      %c1_26 = arith.constant 1 : index
      %c0_27 = arith.constant 0 : index
      %41 = vector.load %arg3[%c0_25, %40, %c1_26, %c0_27] : memref<1x18x9x256xf32, #tpu.memory_space<vmem>>, vector<1x1x8x128xf32>
      %42 = vector.shape_cast %41 : vector<1x1x8x128xf32> to vector<8x128xf32>
      %c0_28 = arith.constant 0 : index
      %c2 = arith.constant 2 : index
      %c0_29 = arith.constant 0 : index
      %43 = vector.load %arg4[%c0_28, %c2, %c0_29] : memref<3x3x128xf32, #tpu.memory_space<vmem>>, vector<1x1x128xf32>
      %44 = vector.shape_cast %43 : vector<1x1x128xf32> to vector<128xf32>
      %45 = vector.shape_cast %44 : vector<128xf32> to vector<1x128xf32>
      %46 = vector.broadcast %45 : vector<1x128xf32> to vector<8x128xf32>
      %47 = arith.mulf %42, %46 : vector<8x128xf32>
      %48 = arith.addf %39, %47 : vector<8x128xf32>
      %c0_i32_30 = arith.constant 0 : i32
      %49 = arith.addi %18, %c0_i32_30 : i32
      %c1_i32 = arith.constant 1 : i32
      %50 = arith.addi %49, %c1_i32 : i32
      %c0_31 = arith.constant 0 : index
      %51 = arith.index_cast %50 : i32 to index
      %c0_32 = arith.constant 0 : index
      %c0_33 = arith.constant 0 : index
      %52 = vector.load %arg3[%c0_31, %51, %c0_32, %c0_33] : memref<1x18x9x256xf32, #tpu.memory_space<vmem>>, vector<1x1x8x128xf32>
      %53 = vector.shape_cast %52 : vector<1x1x8x128xf32> to vector<8x128xf32>
      %c1_34 = arith.constant 1 : index
      %c0_35 = arith.constant 0 : index
      %c0_36 = arith.constant 0 : index
      %54 = vector.load %arg4[%c1_34, %c0_35, %c0_36] : memref<3x3x128xf32, #tpu.memory_space<vmem>>, vector<1x1x128xf32>
      %55 = vector.shape_cast %54 : vector<1x1x128xf32> to vector<128xf32>
      %56 = vector.shape_cast %55 : vector<128xf32> to vector<1x128xf32>
      %57 = vector.broadcast %56 : vector<1x128xf32> to vector<8x128xf32>
      %58 = arith.mulf %53, %57 : vector<8x128xf32>
      %59 = arith.addf %48, %58 : vector<8x128xf32>
      %c0_37 = arith.constant 0 : index
      %60 = arith.index_cast %50 : i32 to index
      %c0_38 = arith.constant 0 : index
      %c128_39 = arith.constant 128 : index
      %61 = vector.load %arg3[%c0_37, %60, %c0_38, %c128_39] : memref<1x18x9x256xf32, #tpu.memory_space<vmem>>, vector<1x1x8x128xf32>
      %62 = vector.shape_cast %61 : vector<1x1x8x128xf32> to vector<8x128xf32>
      %c1_40 = arith.constant 1 : index
      %c1_41 = arith.constant 1 : index
      %c0_42 = arith.constant 0 : index
      %63 = vector.load %arg4[%c1_40, %c1_41, %c0_42] : memref<3x3x128xf32, #tpu.memory_space<vmem>>, vector<1x1x128xf32>
      %64 = vector.shape_cast %63 : vector<1x1x128xf32> to vector<128xf32>
      %65 = vector.shape_cast %64 : vector<128xf32> to vector<1x128xf32>
      %66 = vector.broadcast %65 : vector<1x128xf32> to vector<8x128xf32>
      %67 = arith.mulf %62, %66 : vector<8x128xf32>
      %68 = arith.addf %59, %67 : vector<8x128xf32>
      %c0_43 = arith.constant 0 : index
      %69 = arith.index_cast %50 : i32 to index
      %c1_44 = arith.constant 1 : index
      %c0_45 = arith.constant 0 : index
      %70 = vector.load %arg3[%c0_43, %69, %c1_44, %c0_45] : memref<1x18x9x256xf32, #tpu.memory_space<vmem>>, vector<1x1x8x128xf32>
      %71 = vector.shape_cast %70 : vector<1x1x8x128xf32> to vector<8x128xf32>
      %c1_46 = arith.constant 1 : index
      %c2_47 = arith.constant 2 : index
      %c0_48 = arith.constant 0 : index
      %72 = vector.load %arg4[%c1_46, %c2_47, %c0_48] : memref<3x3x128xf32, #tpu.memory_space<vmem>>, vector<1x1x128xf32>
      %73 = vector.shape_cast %72 : vector<1x1x128xf32> to vector<128xf32>
      %74 = vector.shape_cast %73 : vector<128xf32> to vector<1x128xf32>
      %75 = vector.broadcast %74 : vector<1x128xf32> to vector<8x128xf32>
      %76 = arith.mulf %71, %75 : vector<8x128xf32>
      %77 = arith.addf %68, %76 : vector<8x128xf32>
      %c0_i32_49 = arith.constant 0 : i32
      %78 = arith.addi %18, %c0_i32_49 : i32
      %c2_i32 = arith.constant 2 : i32
      %79 = arith.addi %78, %c2_i32 : i32
      %c0_50 = arith.constant 0 : index
      %80 = arith.index_cast %79 : i32 to index
      %c0_51 = arith.constant 0 : index
      %c0_52 = arith.constant 0 : index
      %81 = vector.load %arg3[%c0_50, %80, %c0_51, %c0_52] : memref<1x18x9x256xf32, #tpu.memory_space<vmem>>, vector<1x1x8x128xf32>
      %82 = vector.shape_cast %81 : vector<1x1x8x128xf32> to vector<8x128xf32>
      %c2_53 = arith.constant 2 : index
      %c0_54 = arith.constant 0 : index
      %c0_55 = arith.constant 0 : index
      %83 = vector.load %arg4[%c2_53, %c0_54, %c0_55] : memref<3x3x128xf32, #tpu.memory_space<vmem>>, vector<1x1x128xf32>
      %84 = vector.shape_cast %83 : vector<1x1x128xf32> to vector<128xf32>
      %85 = vector.shape_cast %84 : vector<128xf32> to vector<1x128xf32>
      %86 = vector.broadcast %85 : vector<1x128xf32> to vector<8x128xf32>
      %87 = arith.mulf %82, %86 : vector<8x128xf32>
      %88 = arith.addf %77, %87 : vector<8x128xf32>
      %c0_56 = arith.constant 0 : index
      %89 = arith.index_cast %79 : i32 to index
      %c0_57 = arith.constant 0 : index
      %c128_58 = arith.constant 128 : index
      %90 = vector.load %arg3[%c0_56, %89, %c0_57, %c128_58] : memref<1x18x9x256xf32, #tpu.memory_space<vmem>>, vector<1x1x8x128xf32>
      %91 = vector.shape_cast %90 : vector<1x1x8x128xf32> to vector<8x128xf32>
      %c2_59 = arith.constant 2 : index
      %c1_60 = arith.constant 1 : index
      %c0_61 = arith.constant 0 : index
      %92 = vector.load %arg4[%c2_59, %c1_60, %c0_61] : memref<3x3x128xf32, #tpu.memory_space<vmem>>, vector<1x1x128xf32>
      %93 = vector.shape_cast %92 : vector<1x1x128xf32> to vector<128xf32>
      %94 = vector.shape_cast %93 : vector<128xf32> to vector<1x128xf32>
      %95 = vector.broadcast %94 : vector<1x128xf32> to vector<8x128xf32>
      %96 = arith.mulf %91, %95 : vector<8x128xf32>
      %97 = arith.addf %88, %96 : vector<8x128xf32>
      %c0_62 = arith.constant 0 : index
      %98 = arith.index_cast %79 : i32 to index
      %c1_63 = arith.constant 1 : index
      %c0_64 = arith.constant 0 : index
      %99 = vector.load %arg3[%c0_62, %98, %c1_63, %c0_64] : memref<1x18x9x256xf32, #tpu.memory_space<vmem>>, vector<1x1x8x128xf32>
      %100 = vector.shape_cast %99 : vector<1x1x8x128xf32> to vector<8x128xf32>
      %c2_65 = arith.constant 2 : index
      %c2_66 = arith.constant 2 : index
      %c0_67 = arith.constant 0 : index
      %101 = vector.load %arg4[%c2_65, %c2_66, %c0_67] : memref<3x3x128xf32, #tpu.memory_space<vmem>>, vector<1x1x128xf32>
      %102 = vector.shape_cast %101 : vector<1x1x128xf32> to vector<128xf32>
      %103 = vector.shape_cast %102 : vector<128xf32> to vector<1x128xf32>
      %104 = vector.broadcast %103 : vector<1x128xf32> to vector<8x128xf32>
      %105 = arith.mulf %100, %104 : vector<8x128xf32>
      %106 = arith.addf %97, %105 : vector<8x128xf32>
      %107 = vector.shape_cast %17 : vector<128xf32> to vector<1x128xf32>
      %108 = vector.broadcast %107 : vector<1x128xf32> to vector<8x128xf32>
      %109 = arith.addf %106, %108 : vector<8x128xf32>
      %cst_68 = arith.constant 0.000000e+00 : f32
      %110 = vector.broadcast %cst_68 : f32 to vector<8x128xf32>
      %111 = arith.maximumf %109, %110 : vector<8x128xf32>
      %c0_69 = arith.constant 0 : index
      %c0_70 = arith.constant 0 : index
      %112 = vector.load %arg9[%c0_69, %c0_70] : memref<32x128xf32, #tpu.memory_space<vmem>>, vector<8x128xf32>
      tpu.vector_store %arg9[%c0_69, %c0_70], %111 {strides = array<i32>} : memref<32x128xf32, #tpu.memory_space<vmem>>, vector<8x128xf32>,
      %cst_71 = arith.constant 0.000000e+00 : f32
      %113 = vector.broadcast %cst_71 : f32 to vector<8x128xf32>
      %c2_i32_72 = arith.constant 2 : i32
      %114 = arith.addi %18, %c2_i32_72 : i32
      %c0_i32_73 = arith.constant 0 : i32
      %115 = arith.addi %114, %c0_i32_73 : i32
      %c0_74 = arith.constant 0 : index
      %116 = arith.index_cast %115 : i32 to index
      %c0_75 = arith.constant 0 : index
      %c0_76 = arith.constant 0 : index
      %117 = vector.load %arg3[%c0_74, %116, %c0_75, %c0_76] : memref<1x18x9x256xf32, #tpu.memory_space<vmem>>, vector<1x1x8x128xf32>
      %118 = vector.shape_cast %117 : vector<1x1x8x128xf32> to vector<8x128xf32>
      %c0_77 = arith.constant 0 : index
      %c0_78 = arith.constant 0 : index
      %c0_79 = arith.constant 0 : index
      %119 = vector.load %arg4[%c0_77, %c0_78, %c0_79] : memref<3x3x128xf32, #tpu.memory_space<vmem>>, vector<1x1x128xf32>
      %120 = vector.shape_cast %119 : vector<1x1x128xf32> to vector<128xf32>
      %121 = vector.shape_cast %120 : vector<128xf32> to vector<1x128xf32>
      %122 = vector.broadcast %121 : vector<1x128xf32> to vector<8x128xf32>
      %123 = arith.mulf %118, %122 : vector<8x128xf32>
      %124 = arith.addf %113, %123 : vector<8x128xf32>
      %c0_80 = arith.constant 0 : index
      %125 = arith.index_cast %115 : i32 to index
      %c0_81 = arith.constant 0 : index
      %c128_82 = arith.constant 128 : index
      %126 = vector.load %arg3[%c0_80, %125, %c0_81, %c128_82] : memref<1x18x9x256xf32, #tpu.memory_space<vmem>>, vector<1x1x8x128xf32>
      %127 = vector.shape_cast %126 : vector<1x1x8x128xf32> to vector<8x128xf32>
      %c0_83 = arith.constant 0 : index
      %c1_84 = arith.constant 1 : index
      %c0_85 = arith.constant 0 : index
      %128 = vector.load %arg4[%c0_83, %c1_84, %c0_85] : memref<3x3x128xf32, #tpu.memory_space<vmem>>, vector<1x1x128xf32>
      %129 = vector.shape_cast %128 : vector<1x1x128xf32> to vector<128xf32>
      %130 = vector.shape_cast %129 : vector<128xf32> to vector<1x128xf32>
      %131 = vector.broadcast %130 : vector<1x128xf32> to vector<8x128xf32>
      %132 = arith.mulf %127, %131 : vector<8x128xf32>
      %133 = arith.addf %124, %132 : vector<8x128xf32>
      %c0_86 = arith.constant 0 : index
      %134 = arith.index_cast %115 : i32 to index
      %c1_87 = arith.constant 1 : index
      %c0_88 = arith.constant 0 : index
      %135 = vector.load %arg3[%c0_86, %134, %c1_87, %c0_88] : memref<1x18x9x256xf32, #tpu.memory_space<vmem>>, vector<1x1x8x128xf32>
      %136 = vector.shape_cast %135 : vector<1x1x8x128xf32> to vector<8x128xf32>
      %c0_89 = arith.constant 0 : index
      %c2_90 = arith.constant 2 : index
      %c0_91 = arith.constant 0 : index
      %137 = vector.load %arg4[%c0_89, %c2_90, %c0_91] : memref<3x3x128xf32, #tpu.memory_space<vmem>>, vector<1x1x128xf32>
      %138 = vector.shape_cast %137 : vector<1x1x128xf32> to vector<128xf32>
      %139 = vector.shape_cast %138 : vector<128xf32> to vector<1x128xf32>
      %140 = vector.broadcast %139 : vector<1x128xf32> to vector<8x128xf32>
      %141 = arith.mulf %136, %140 : vector<8x128xf32>
      %142 = arith.addf %133, %141 : vector<8x128xf32>
      %c2_i32_92 = arith.constant 2 : i32
      %143 = arith.addi %18, %c2_i32_92 : i32
      %c1_i32_93 = arith.constant 1 : i32
      %144 = arith.addi %143, %c1_i32_93 : i32
      %c0_94 = arith.constant 0 : index
      %145 = arith.index_cast %144 : i32 to index
      %c0_95 = arith.constant 0 : index
      %c0_96 = arith.constant 0 : index
      %146 = vector.load %arg3[%c0_94, %145, %c0_95, %c0_96] : memref<1x18x9x256xf32, #tpu.memory_space<vmem>>, vector<1x1x8x128xf32>
      %147 = vector.shape_cast %146 : vector<1x1x8x128xf32> to vector<8x128xf32>
      %c1_97 = arith.constant 1 : index
      %c0_98 = arith.constant 0 : index
      %c0_99 = arith.constant 0 : index
      %148 = vector.load %arg4[%c1_97, %c0_98, %c0_99] : memref<3x3x128xf32, #tpu.memory_space<vmem>>, vector<1x1x128xf32>
      %149 = vector.shape_cast %148 : vector<1x1x128xf32> to vector<128xf32>
      %150 = vector.shape_cast %149 : vector<128xf32> to vector<1x128xf32>
      %151 = vector.broadcast %150 : vector<1x128xf32> to vector<8x128xf32>
      %152 = arith.mulf %147, %151 : vector<8x128xf32>
      %153 = arith.addf %142, %152 : vector<8x128xf32>
      %c0_100 = arith.constant 0 : index
      %154 = arith.index_cast %144 : i32 to index
      %c0_101 = arith.constant 0 : index
      %c128_102 = arith.constant 128 : index
      %155 = vector.load %arg3[%c0_100, %154, %c0_101, %c128_102] : memref<1x18x9x256xf32, #tpu.memory_space<vmem>>, vector<1x1x8x128xf32>
      %156 = vector.shape_cast %155 : vector<1x1x8x128xf32> to vector<8x128xf32>
      %c1_103 = arith.constant 1 : index
      %c1_104 = arith.constant 1 : index
      %c0_105 = arith.constant 0 : index
      %157 = vector.load %arg4[%c1_103, %c1_104, %c0_105] : memref<3x3x128xf32, #tpu.memory_space<vmem>>, vector<1x1x128xf32>
      %158 = vector.shape_cast %157 : vector<1x1x128xf32> to vector<128xf32>
      %159 = vector.shape_cast %158 : vector<128xf32> to vector<1x128xf32>
      %160 = vector.broadcast %159 : vector<1x128xf32> to vector<8x128xf32>
      %161 = arith.mulf %156, %160 : vector<8x128xf32>
      %162 = arith.addf %153, %161 : vector<8x128xf32>
      %c0_106 = arith.constant 0 : index
      %163 = arith.index_cast %144 : i32 to index
      %c1_107 = arith.constant 1 : index
      %c0_108 = arith.constant 0 : index
      %164 = vector.load %arg3[%c0_106, %163, %c1_107, %c0_108] : memref<1x18x9x256xf32, #tpu.memory_space<vmem>>, vector<1x1x8x128xf32>
      %165 = vector.shape_cast %164 : vector<1x1x8x128xf32> to vector<8x128xf32>
      %c1_109 = arith.constant 1 : index
      %c2_110 = arith.constant 2 : index
      %c0_111 = arith.constant 0 : index
      %166 = vector.load %arg4[%c1_109, %c2_110, %c0_111] : memref<3x3x128xf32, #tpu.memory_space<vmem>>, vector<1x1x128xf32>
      %167 = vector.shape_cast %166 : vector<1x1x128xf32> to vector<128xf32>
      %168 = vector.shape_cast %167 : vector<128xf32> to vector<1x128xf32>
      %169 = vector.broadcast %168 : vector<1x128xf32> to vector<8x128xf32>
      %170 = arith.mulf %165, %169 : vector<8x128xf32>
      %171 = arith.addf %162, %170 : vector<8x128xf32>
      %c2_i32_112 = arith.constant 2 : i32
      %172 = arith.addi %18, %c2_i32_112 : i32
      %c2_i32_113 = arith.constant 2 : i32
      %173 = arith.addi %172, %c2_i32_113 : i32
      %c0_114 = arith.constant 0 : index
      %174 = arith.index_cast %173 : i32 to index
      %c0_115 = arith.constant 0 : index
      %c0_116 = arith.constant 0 : index
      %175 = vector.load %arg3[%c0_114, %174, %c0_115, %c0_116] : memref<1x18x9x256xf32, #tpu.memory_space<vmem>>, vector<1x1x8x128xf32>
      %176 = vector.shape_cast %175 : vector<1x1x8x128xf32> to vector<8x128xf32>
      %c2_117 = arith.constant 2 : index
      %c0_118 = arith.constant 0 : index
      %c0_119 = arith.constant 0 : index
      %177 = vector.load %arg4[%c2_117, %c0_118, %c0_119] : memref<3x3x128xf32, #tpu.memory_space<vmem>>, vector<1x1x128xf32>
      %178 = vector.shape_cast %177 : vector<1x1x128xf32> to vector<128xf32>
      %179 = vector.shape_cast %178 : vector<128xf32> to vector<1x128xf32>
      %180 = vector.broadcast %179 : vector<1x128xf32> to vector<8x128xf32>
      %181 = arith.mulf %176, %180 : vector<8x128xf32>
      %182 = arith.addf %171, %181 : vector<8x128xf32>
      %c0_120 = arith.constant 0 : index
      %183 = arith.index_cast %173 : i32 to index
      %c0_121 = arith.constant 0 : index
      %c128_122 = arith.constant 128 : index
      %184 = vector.load %arg3[%c0_120, %183, %c0_121, %c128_122] : memref<1x18x9x256xf32, #tpu.memory_space<vmem>>, vector<1x1x8x128xf32>
      %185 = vector.shape_cast %184 : vector<1x1x8x128xf32> to vector<8x128xf32>
      %c2_123 = arith.constant 2 : index
      %c1_124 = arith.constant 1 : index
      %c0_125 = arith.constant 0 : index
      %186 = vector.load %arg4[%c2_123, %c1_124, %c0_125] : memref<3x3x128xf32, #tpu.memory_space<vmem>>, vector<1x1x128xf32>
      %187 = vector.shape_cast %186 : vector<1x1x128xf32> to vector<128xf32>
      %188 = vector.shape_cast %187 : vector<128xf32> to vector<1x128xf32>
      %189 = vector.broadcast %188 : vector<1x128xf32> to vector<8x128xf32>
      %190 = arith.mulf %185, %189 : vector<8x128xf32>
      %191 = arith.addf %182, %190 : vector<8x128xf32>
      %c0_126 = arith.constant 0 : index
      %192 = arith.index_cast %173 : i32 to index
      %c1_127 = arith.constant 1 : index
      %c0_128 = arith.constant 0 : index
      %193 = vector.load %arg3[%c0_126, %192, %c1_127, %c0_128] : memref<1x18x9x256xf32, #tpu.memory_space<vmem>>, vector<1x1x8x128xf32>
      %194 = vector.shape_cast %193 : vector<1x1x8x128xf32> to vector<8x128xf32>
      %c2_129 = arith.constant 2 : index
      %c2_130 = arith.constant 2 : index
      %c0_131 = arith.constant 0 : index
      %195 = vector.load %arg4[%c2_129, %c2_130, %c0_131] : memref<3x3x128xf32, #tpu.memory_space<vmem>>, vector<1x1x128xf32>
      %196 = vector.shape_cast %195 : vector<1x1x128xf32> to vector<128xf32>
      %197 = vector.shape_cast %196 : vector<128xf32> to vector<1x128xf32>
      %198 = vector.broadcast %197 : vector<1x128xf32> to vector<8x128xf32>
      %199 = arith.mulf %194, %198 : vector<8x128xf32>
      %200 = arith.addf %191, %199 : vector<8x128xf32>
      %201 = vector.shape_cast %17 : vector<128xf32> to vector<1x128xf32>
      %202 = vector.broadcast %201 : vector<1x128xf32> to vector<8x128xf32>
      %203 = arith.addf %200, %202 : vector<8x128xf32>
      %cst_132 = arith.constant 0.000000e+00 : f32
      %204 = vector.broadcast %cst_132 : f32 to vector<8x128xf32>
      %205 = arith.maximumf %203, %204 : vector<8x128xf32>
      %c8 = arith.constant 8 : index
      %c0_133 = arith.constant 0 : index
      %206 = vector.load %arg9[%c8, %c0_133] : memref<32x128xf32, #tpu.memory_space<vmem>>, vector<8x128xf32>
      tpu.vector_store %arg9[%c8, %c0_133], %205 {strides = array<i32>} : memref<32x128xf32, #tpu.memory_space<vmem>>, vector<8x128xf32>,
      %cst_134 = arith.constant 0.000000e+00 : f32
      %207 = vector.broadcast %cst_134 : f32 to vector<8x128xf32>
      %c4_i32 = arith.constant 4 : i32
      %208 = arith.addi %18, %c4_i32 : i32
      %c0_i32_135 = arith.constant 0 : i32
      %209 = arith.addi %208, %c0_i32_135 : i32
      %c0_136 = arith.constant 0 : index
      %210 = arith.index_cast %209 : i32 to index
      %c0_137 = arith.constant 0 : index
      %c0_138 = arith.constant 0 : index
      %211 = vector.load %arg3[%c0_136, %210, %c0_137, %c0_138] : memref<1x18x9x256xf32, #tpu.memory_space<vmem>>, vector<1x1x8x128xf32>
      %212 = vector.shape_cast %211 : vector<1x1x8x128xf32> to vector<8x128xf32>
      %c0_139 = arith.constant 0 : index
      %c0_140 = arith.constant 0 : index
      %c0_141 = arith.constant 0 : index
      %213 = vector.load %arg4[%c0_139, %c0_140, %c0_141] : memref<3x3x128xf32, #tpu.memory_space<vmem>>, vector<1x1x128xf32>
      %214 = vector.shape_cast %213 : vector<1x1x128xf32> to vector<128xf32>
      %215 = vector.shape_cast %214 : vector<128xf32> to vector<1x128xf32>
      %216 = vector.broadcast %215 : vector<1x128xf32> to vector<8x128xf32>
      %217 = arith.mulf %212, %216 : vector<8x128xf32>
      %218 = arith.addf %207, %217 : vector<8x128xf32>
      %c0_142 = arith.constant 0 : index
      %219 = arith.index_cast %209 : i32 to index
      %c0_143 = arith.constant 0 : index
      %c128_144 = arith.constant 128 : index
      %220 = vector.load %arg3[%c0_142, %219, %c0_143, %c128_144] : memref<1x18x9x256xf32, #tpu.memory_space<vmem>>, vector<1x1x8x128xf32>
      %221 = vector.shape_cast %220 : vector<1x1x8x128xf32> to vector<8x128xf32>
      %c0_145 = arith.constant 0 : index
      %c1_146 = arith.constant 1 : index
      %c0_147 = arith.constant 0 : index
      %222 = vector.load %arg4[%c0_145, %c1_146, %c0_147] : memref<3x3x128xf32, #tpu.memory_space<vmem>>, vector<1x1x128xf32>
      %223 = vector.shape_cast %222 : vector<1x1x128xf32> to vector<128xf32>
      %224 = vector.shape_cast %223 : vector<128xf32> to vector<1x128xf32>
      %225 = vector.broadcast %224 : vector<1x128xf32> to vector<8x128xf32>
      %226 = arith.mulf %221, %225 : vector<8x128xf32>
      %227 = arith.addf %218, %226 : vector<8x128xf32>
      %c0_148 = arith.constant 0 : index
      %228 = arith.index_cast %209 : i32 to index
      %c1_149 = arith.constant 1 : index
      %c0_150 = arith.constant 0 : index
      %229 = vector.load %arg3[%c0_148, %228, %c1_149, %c0_150] : memref<1x18x9x256xf32, #tpu.memory_space<vmem>>, vector<1x1x8x128xf32>
      %230 = vector.shape_cast %229 : vector<1x1x8x128xf32> to vector<8x128xf32>
      %c0_151 = arith.constant 0 : index
      %c2_152 = arith.constant 2 : index
      %c0_153 = arith.constant 0 : index
      %231 = vector.load %arg4[%c0_151, %c2_152, %c0_153] : memref<3x3x128xf32, #tpu.memory_space<vmem>>, vector<1x1x128xf32>
      %232 = vector.shape_cast %231 : vector<1x1x128xf32> to vector<128xf32>
      %233 = vector.shape_cast %232 : vector<128xf32> to vector<1x128xf32>
      %234 = vector.broadcast %233 : vector<1x128xf32> to vector<8x128xf32>
      %235 = arith.mulf %230, %234 : vector<8x128xf32>
      %236 = arith.addf %227, %235 : vector<8x128xf32>
      %c4_i32_154 = arith.constant 4 : i32
      %237 = arith.addi %18, %c4_i32_154 : i32
      %c1_i32_155 = arith.constant 1 : i32
      %238 = arith.addi %237, %c1_i32_155 : i32
      %c0_156 = arith.constant 0 : index
      %239 = arith.index_cast %238 : i32 to index
      %c0_157 = arith.constant 0 : index
      %c0_158 = arith.constant 0 : index
      %240 = vector.load %arg3[%c0_156, %239, %c0_157, %c0_158] : memref<1x18x9x256xf32, #tpu.memory_space<vmem>>, vector<1x1x8x128xf32>
      %241 = vector.shape_cast %240 : vector<1x1x8x128xf32> to vector<8x128xf32>
      %c1_159 = arith.constant 1 : index
      %c0_160 = arith.constant 0 : index
      %c0_161 = arith.constant 0 : index
      %242 = vector.load %arg4[%c1_159, %c0_160, %c0_161] : memref<3x3x128xf32, #tpu.memory_space<vmem>>, vector<1x1x128xf32>
      %243 = vector.shape_cast %242 : vector<1x1x128xf32> to vector<128xf32>
      %244 = vector.shape_cast %243 : vector<128xf32> to vector<1x128xf32>
      %245 = vector.broadcast %244 : vector<1x128xf32> to vector<8x128xf32>
      %246 = arith.mulf %241, %245 : vector<8x128xf32>
      %247 = arith.addf %236, %246 : vector<8x128xf32>
      %c0_162 = arith.constant 0 : index
      %248 = arith.index_cast %238 : i32 to index
      %c0_163 = arith.constant 0 : index
      %c128_164 = arith.constant 128 : index
      %249 = vector.load %arg3[%c0_162, %248, %c0_163, %c128_164] : memref<1x18x9x256xf32, #tpu.memory_space<vmem>>, vector<1x1x8x128xf32>
      %250 = vector.shape_cast %249 : vector<1x1x8x128xf32> to vector<8x128xf32>
      %c1_165 = arith.constant 1 : index
      %c1_166 = arith.constant 1 : index
      %c0_167 = arith.constant 0 : index
      %251 = vector.load %arg4[%c1_165, %c1_166, %c0_167] : memref<3x3x128xf32, #tpu.memory_space<vmem>>, vector<1x1x128xf32>
      %252 = vector.shape_cast %251 : vector<1x1x128xf32> to vector<128xf32>
      %253 = vector.shape_cast %252 : vector<128xf32> to vector<1x128xf32>
      %254 = vector.broadcast %253 : vector<1x128xf32> to vector<8x128xf32>
      %255 = arith.mulf %250, %254 : vector<8x128xf32>
      %256 = arith.addf %247, %255 : vector<8x128xf32>
      %c0_168 = arith.constant 0 : index
      %257 = arith.index_cast %238 : i32 to index
      %c1_169 = arith.constant 1 : index
      %c0_170 = arith.constant 0 : index
      %258 = vector.load %arg3[%c0_168, %257, %c1_169, %c0_170] : memref<1x18x9x256xf32, #tpu.memory_space<vmem>>, vector<1x1x8x128xf32>
      %259 = vector.shape_cast %258 : vector<1x1x8x128xf32> to vector<8x128xf32>
      %c1_171 = arith.constant 1 : index
      %c2_172 = arith.constant 2 : index
      %c0_173 = arith.constant 0 : index
      %260 = vector.load %arg4[%c1_171, %c2_172, %c0_173] : memref<3x3x128xf32, #tpu.memory_space<vmem>>, vector<1x1x128xf32>
      %261 = vector.shape_cast %260 : vector<1x1x128xf32> to vector<128xf32>
      %262 = vector.shape_cast %261 : vector<128xf32> to vector<1x128xf32>
      %263 = vector.broadcast %262 : vector<1x128xf32> to vector<8x128xf32>
      %264 = arith.mulf %259, %263 : vector<8x128xf32>
      %265 = arith.addf %256, %264 : vector<8x128xf32>
      %c4_i32_174 = arith.constant 4 : i32
      %266 = arith.addi %18, %c4_i32_174 : i32
      %c2_i32_175 = arith.constant 2 : i32
      %267 = arith.addi %266, %c2_i32_175 : i32
      %c0_176 = arith.constant 0 : index
      %268 = arith.index_cast %267 : i32 to index
      %c0_177 = arith.constant 0 : index
      %c0_178 = arith.constant 0 : index
      %269 = vector.load %arg3[%c0_176, %268, %c0_177, %c0_178] : memref<1x18x9x256xf32, #tpu.memory_space<vmem>>, vector<1x1x8x128xf32>
      %270 = vector.shape_cast %269 : vector<1x1x8x128xf32> to vector<8x128xf32>
      %c2_179 = arith.constant 2 : index
      %c0_180 = arith.constant 0 : index
      %c0_181 = arith.constant 0 : index
      %271 = vector.load %arg4[%c2_179, %c0_180, %c0_181] : memref<3x3x128xf32, #tpu.memory_space<vmem>>, vector<1x1x128xf32>
      %272 = vector.shape_cast %271 : vector<1x1x128xf32> to vector<128xf32>
      %273 = vector.shape_cast %272 : vector<128xf32> to vector<1x128xf32>
      %274 = vector.broadcast %273 : vector<1x128xf32> to vector<8x128xf32>
      %275 = arith.mulf %270, %274 : vector<8x128xf32>
      %276 = arith.addf %265, %275 : vector<8x128xf32>
      %c0_182 = arith.constant 0 : index
      %277 = arith.index_cast %267 : i32 to index
      %c0_183 = arith.constant 0 : index
      %c128_184 = arith.constant 128 : index
      %278 = vector.load %arg3[%c0_182, %277, %c0_183, %c128_184] : memref<1x18x9x256xf32, #tpu.memory_space<vmem>>, vector<1x1x8x128xf32>
      %279 = vector.shape_cast %278 : vector<1x1x8x128xf32> to vector<8x128xf32>
      %c2_185 = arith.constant 2 : index
      %c1_186 = arith.constant 1 : index
      %c0_187 = arith.constant 0 : index
      %280 = vector.load %arg4[%c2_185, %c1_186, %c0_187] : memref<3x3x128xf32, #tpu.memory_space<vmem>>, vector<1x1x128xf32>
      %281 = vector.shape_cast %280 : vector<1x1x128xf32> to vector<128xf32>
      %282 = vector.shape_cast %281 : vector<128xf32> to vector<1x128xf32>
      %283 = vector.broadcast %282 : vector<1x128xf32> to vector<8x128xf32>
      %284 = arith.mulf %279, %283 : vector<8x128xf32>
      %285 = arith.addf %276, %284 : vector<8x128xf32>
      %c0_188 = arith.constant 0 : index
      %286 = arith.index_cast %267 : i32 to index
      %c1_189 = arith.constant 1 : index
      %c0_190 = arith.constant 0 : index
      %287 = vector.load %arg3[%c0_188, %286, %c1_189, %c0_190] : memref<1x18x9x256xf32, #tpu.memory_space<vmem>>, vector<1x1x8x128xf32>
      %288 = vector.shape_cast %287 : vector<1x1x8x128xf32> to vector<8x128xf32>
      %c2_191 = arith.constant 2 : index
      %c2_192 = arith.constant 2 : index
      %c0_193 = arith.constant 0 : index
      %289 = vector.load %arg4[%c2_191, %c2_192, %c0_193] : memref<3x3x128xf32, #tpu.memory_space<vmem>>, vector<1x1x128xf32>
      %290 = vector.shape_cast %289 : vector<1x1x128xf32> to vector<128xf32>
      %291 = vector.shape_cast %290 : vector<128xf32> to vector<1x128xf32>
      %292 = vector.broadcast %291 : vector<1x128xf32> to vector<8x128xf32>
      %293 = arith.mulf %288, %292 : vector<8x128xf32>
      %294 = arith.addf %285, %293 : vector<8x128xf32>
      %295 = vector.shape_cast %17 : vector<128xf32> to vector<1x128xf32>
      %296 = vector.broadcast %295 : vector<1x128xf32> to vector<8x128xf32>
      %297 = arith.addf %294, %296 : vector<8x128xf32>
      %cst_194 = arith.constant 0.000000e+00 : f32
      %298 = vector.broadcast %cst_194 : f32 to vector<8x128xf32>
      %299 = arith.maximumf %297, %298 : vector<8x128xf32>
      %c16 = arith.constant 16 : index
      %c0_195 = arith.constant 0 : index
      %300 = vector.load %arg9[%c16, %c0_195] : memref<32x128xf32, #tpu.memory_space<vmem>>, vector<8x128xf32>
      tpu.vector_store %arg9[%c16, %c0_195], %299 {strides = array<i32>} : memref<32x128xf32, #tpu.memory_space<vmem>>, vector<8x128xf32>,
      %cst_196 = arith.constant 0.000000e+00 : f32
      %301 = vector.broadcast %cst_196 : f32 to vector<8x128xf32>
      %c6_i32 = arith.constant 6 : i32
      %302 = arith.addi %18, %c6_i32 : i32
      %c0_i32_197 = arith.constant 0 : i32
      %303 = arith.addi %302, %c0_i32_197 : i32
      %c0_198 = arith.constant 0 : index
      %304 = arith.index_cast %303 : i32 to index
      %c0_199 = arith.constant 0 : index
      %c0_200 = arith.constant 0 : index
      %305 = vector.load %arg3[%c0_198, %304, %c0_199, %c0_200] : memref<1x18x9x256xf32, #tpu.memory_space<vmem>>, vector<1x1x8x128xf32>
      %306 = vector.shape_cast %305 : vector<1x1x8x128xf32> to vector<8x128xf32>
      %c0_201 = arith.constant 0 : index
      %c0_202 = arith.constant 0 : index
      %c0_203 = arith.constant 0 : index
      %307 = vector.load %arg4[%c0_201, %c0_202, %c0_203] : memref<3x3x128xf32, #tpu.memory_space<vmem>>, vector<1x1x128xf32>
      %308 = vector.shape_cast %307 : vector<1x1x128xf32> to vector<128xf32>
      %309 = vector.shape_cast %308 : vector<128xf32> to vector<1x128xf32>
      %310 = vector.broadcast %309 : vector<1x128xf32> to vector<8x128xf32>
      %311 = arith.mulf %306, %310 : vector<8x128xf32>
      %312 = arith.addf %301, %311 : vector<8x128xf32>
      %c0_204 = arith.constant 0 : index
      %313 = arith.index_cast %303 : i32 to index
      %c0_205 = arith.constant 0 : index
      %c128_206 = arith.constant 128 : index
      %314 = vector.load %arg3[%c0_204, %313, %c0_205, %c128_206] : memref<1x18x9x256xf32, #tpu.memory_space<vmem>>, vector<1x1x8x128xf32>
      %315 = vector.shape_cast %314 : vector<1x1x8x128xf32> to vector<8x128xf32>
      %c0_207 = arith.constant 0 : index
      %c1_208 = arith.constant 1 : index
      %c0_209 = arith.constant 0 : index
      %316 = vector.load %arg4[%c0_207, %c1_208, %c0_209] : memref<3x3x128xf32, #tpu.memory_space<vmem>>, vector<1x1x128xf32>
      %317 = vector.shape_cast %316 : vector<1x1x128xf32> to vector<128xf32>
      %318 = vector.shape_cast %317 : vector<128xf32> to vector<1x128xf32>
      %319 = vector.broadcast %318 : vector<1x128xf32> to vector<8x128xf32>
      %320 = arith.mulf %315, %319 : vector<8x128xf32>
      %321 = arith.addf %312, %320 : vector<8x128xf32>
      %c0_210 = arith.constant 0 : index
      %322 = arith.index_cast %303 : i32 to index
      %c1_211 = arith.constant 1 : index
      %c0_212 = arith.constant 0 : index
      %323 = vector.load %arg3[%c0_210, %322, %c1_211, %c0_212] : memref<1x18x9x256xf32, #tpu.memory_space<vmem>>, vector<1x1x8x128xf32>
      %324 = vector.shape_cast %323 : vector<1x1x8x128xf32> to vector<8x128xf32>
      %c0_213 = arith.constant 0 : index
      %c2_214 = arith.constant 2 : index
      %c0_215 = arith.constant 0 : index
      %325 = vector.load %arg4[%c0_213, %c2_214, %c0_215] : memref<3x3x128xf32, #tpu.memory_space<vmem>>, vector<1x1x128xf32>
      %326 = vector.shape_cast %325 : vector<1x1x128xf32> to vector<128xf32>
      %327 = vector.shape_cast %326 : vector<128xf32> to vector<1x128xf32>
      %328 = vector.broadcast %327 : vector<1x128xf32> to vector<8x128xf32>
      %329 = arith.mulf %324, %328 : vector<8x128xf32>
      %330 = arith.addf %321, %329 : vector<8x128xf32>
      %c6_i32_216 = arith.constant 6 : i32
      %331 = arith.addi %18, %c6_i32_216 : i32
      %c1_i32_217 = arith.constant 1 : i32
      %332 = arith.addi %331, %c1_i32_217 : i32
      %c0_218 = arith.constant 0 : index
      %333 = arith.index_cast %332 : i32 to index
      %c0_219 = arith.constant 0 : index
      %c0_220 = arith.constant 0 : index
      %334 = vector.load %arg3[%c0_218, %333, %c0_219, %c0_220] : memref<1x18x9x256xf32, #tpu.memory_space<vmem>>, vector<1x1x8x128xf32>
      %335 = vector.shape_cast %334 : vector<1x1x8x128xf32> to vector<8x128xf32>
      %c1_221 = arith.constant 1 : index
      %c0_222 = arith.constant 0 : index
      %c0_223 = arith.constant 0 : index
      %336 = vector.load %arg4[%c1_221, %c0_222, %c0_223] : memref<3x3x128xf32, #tpu.memory_space<vmem>>, vector<1x1x128xf32>
      %337 = vector.shape_cast %336 : vector<1x1x128xf32> to vector<128xf32>
      %338 = vector.shape_cast %337 : vector<128xf32> to vector<1x128xf32>
      %339 = vector.broadcast %338 : vector<1x128xf32> to vector<8x128xf32>
      %340 = arith.mulf %335, %339 : vector<8x128xf32>
      %341 = arith.addf %330, %340 : vector<8x128xf32>
      %c0_224 = arith.constant 0 : index
      %342 = arith.index_cast %332 : i32 to index
      %c0_225 = arith.constant 0 : index
      %c128_226 = arith.constant 128 : index
      %343 = vector.load %arg3[%c0_224, %342, %c0_225, %c128_226] : memref<1x18x9x256xf32, #tpu.memory_space<vmem>>, vector<1x1x8x128xf32>
      %344 = vector.shape_cast %343 : vector<1x1x8x128xf32> to vector<8x128xf32>
      %c1_227 = arith.constant 1 : index
      %c1_228 = arith.constant 1 : index
      %c0_229 = arith.constant 0 : index
      %345 = vector.load %arg4[%c1_227, %c1_228, %c0_229] : memref<3x3x128xf32, #tpu.memory_space<vmem>>, vector<1x1x128xf32>
      %346 = vector.shape_cast %345 : vector<1x1x128xf32> to vector<128xf32>
      %347 = vector.shape_cast %346 : vector<128xf32> to vector<1x128xf32>
      %348 = vector.broadcast %347 : vector<1x128xf32> to vector<8x128xf32>
      %349 = arith.mulf %344, %348 : vector<8x128xf32>
      %350 = arith.addf %341, %349 : vector<8x128xf32>
      %c0_230 = arith.constant 0 : index
      %351 = arith.index_cast %332 : i32 to index
      %c1_231 = arith.constant 1 : index
      %c0_232 = arith.constant 0 : index
      %352 = vector.load %arg3[%c0_230, %351, %c1_231, %c0_232] : memref<1x18x9x256xf32, #tpu.memory_space<vmem>>, vector<1x1x8x128xf32>
      %353 = vector.shape_cast %352 : vector<1x1x8x128xf32> to vector<8x128xf32>
      %c1_233 = arith.constant 1 : index
      %c2_234 = arith.constant 2 : index
      %c0_235 = arith.constant 0 : index
      %354 = vector.load %arg4[%c1_233, %c2_234, %c0_235] : memref<3x3x128xf32, #tpu.memory_space<vmem>>, vector<1x1x128xf32>
      %355 = vector.shape_cast %354 : vector<1x1x128xf32> to vector<128xf32>
      %356 = vector.shape_cast %355 : vector<128xf32> to vector<1x128xf32>
      %357 = vector.broadcast %356 : vector<1x128xf32> to vector<8x128xf32>
      %358 = arith.mulf %353, %357 : vector<8x128xf32>
      %359 = arith.addf %350, %358 : vector<8x128xf32>
      %c6_i32_236 = arith.constant 6 : i32
      %360 = arith.addi %18, %c6_i32_236 : i32
      %c2_i32_237 = arith.constant 2 : i32
      %361 = arith.addi %360, %c2_i32_237 : i32
      %c0_238 = arith.constant 0 : index
      %362 = arith.index_cast %361 : i32 to index
      %c0_239 = arith.constant 0 : index
      %c0_240 = arith.constant 0 : index
      %363 = vector.load %arg3[%c0_238, %362, %c0_239, %c0_240] : memref<1x18x9x256xf32, #tpu.memory_space<vmem>>, vector<1x1x8x128xf32>
      %364 = vector.shape_cast %363 : vector<1x1x8x128xf32> to vector<8x128xf32>
      %c2_241 = arith.constant 2 : index
      %c0_242 = arith.constant 0 : index
      %c0_243 = arith.constant 0 : index
      %365 = vector.load %arg4[%c2_241, %c0_242, %c0_243] : memref<3x3x128xf32, #tpu.memory_space<vmem>>, vector<1x1x128xf32>
      %366 = vector.shape_cast %365 : vector<1x1x128xf32> to vector<128xf32>
      %367 = vector.shape_cast %366 : vector<128xf32> to vector<1x128xf32>
      %368 = vector.broadcast %367 : vector<1x128xf32> to vector<8x128xf32>
      %369 = arith.mulf %364, %368 : vector<8x128xf32>
      %370 = arith.addf %359, %369 : vector<8x128xf32>
      %c0_244 = arith.constant 0 : index
      %371 = arith.index_cast %361 : i32 to index
      %c0_245 = arith.constant 0 : index
      %c128_246 = arith.constant 128 : index
      %372 = vector.load %arg3[%c0_244, %371, %c0_245, %c128_246] : memref<1x18x9x256xf32, #tpu.memory_space<vmem>>, vector<1x1x8x128xf32>
      %373 = vector.shape_cast %372 : vector<1x1x8x128xf32> to vector<8x128xf32>
      %c2_247 = arith.constant 2 : index
      %c1_248 = arith.constant 1 : index
      %c0_249 = arith.constant 0 : index
      %374 = vector.load %arg4[%c2_247, %c1_248, %c0_249] : memref<3x3x128xf32, #tpu.memory_space<vmem>>, vector<1x1x128xf32>
      %375 = vector.shape_cast %374 : vector<1x1x128xf32> to vector<128xf32>
      %376 = vector.shape_cast %375 : vector<128xf32> to vector<1x128xf32>
      %377 = vector.broadcast %376 : vector<1x128xf32> to vector<8x128xf32>
      %378 = arith.mulf %373, %377 : vector<8x128xf32>
      %379 = arith.addf %370, %378 : vector<8x128xf32>
      %c0_250 = arith.constant 0 : index
      %380 = arith.index_cast %361 : i32 to index
      %c1_251 = arith.constant 1 : index
      %c0_252 = arith.constant 0 : index
      %381 = vector.load %arg3[%c0_250, %380, %c1_251, %c0_252] : memref<1x18x9x256xf32, #tpu.memory_space<vmem>>, vector<1x1x8x128xf32>
      %382 = vector.shape_cast %381 : vector<1x1x8x128xf32> to vector<8x128xf32>
      %c2_253 = arith.constant 2 : index
      %c2_254 = arith.constant 2 : index
      %c0_255 = arith.constant 0 : index
      %383 = vector.load %arg4[%c2_253, %c2_254, %c0_255] : memref<3x3x128xf32, #tpu.memory_space<vmem>>, vector<1x1x128xf32>
      %384 = vector.shape_cast %383 : vector<1x1x128xf32> to vector<128xf32>
      %385 = vector.shape_cast %384 : vector<128xf32> to vector<1x128xf32>
      %386 = vector.broadcast %385 : vector<1x128xf32> to vector<8x128xf32>
      %387 = arith.mulf %382, %386 : vector<8x128xf32>
      %388 = arith.addf %379, %387 : vector<8x128xf32>
      %389 = vector.shape_cast %17 : vector<128xf32> to vector<1x128xf32>
      %390 = vector.broadcast %389 : vector<1x128xf32> to vector<8x128xf32>
      %391 = arith.addf %388, %390 : vector<8x128xf32>
      %cst_256 = arith.constant 0.000000e+00 : f32
      %392 = vector.broadcast %cst_256 : f32 to vector<8x128xf32>
      %393 = arith.maximumf %391, %392 : vector<8x128xf32>
      %c24 = arith.constant 24 : index
      %c0_257 = arith.constant 0 : index
      %394 = vector.load %arg9[%c24, %c0_257] : memref<32x128xf32, #tpu.memory_space<vmem>>, vector<8x128xf32>
      tpu.vector_store %arg9[%c24, %c0_257], %393 {strides = array<i32>} : memref<32x128xf32, #tpu.memory_space<vmem>>, vector<8x128xf32>,
    } else {
    }
    %c0 = arith.constant 0 : index
    %c0_1 = arith.constant 0 : index
    %3 = vector.load %arg9[%c0, %c0_1] : memref<32x128xf32, #tpu.memory_space<vmem>>, vector<32x128xf32>
    %c0_2 = arith.constant 0 : index
    %c0_3 = arith.constant 0 : index
    %4 = vector.load %arg6[%c0_2, %c0_3] : memref<128x128xf32, #tpu.memory_space<vmem>>, vector<128x128xf32>
    %cst = arith.constant dense<0.000000e+00> : vector<32x128xf32>
    %5 = tpu.matmul %3, %4, %cst {dimension_numbers = #tpu.dot_dimension_numbers<[1], [0], [0], [1], [0, 0, 1, 1], [], []>} : vector<32x128xf32>, vector<128x128xf32>, vector<32x128xf32> -> vector<32x128xf32>
    %c0_4 = arith.constant 0 : index
    %c0_5 = arith.constant 0 : index
    %6 = vector.load %arg7[%c0_4, %c0_5] : memref<1x128xf32, #tpu.memory_space<vmem>>, vector<1x128xf32>
    %7 = vector.shape_cast %6 : vector<1x128xf32> to vector<128xf32>
    %8 = vector.shape_cast %7 : vector<128xf32> to vector<1x128xf32>
    %9 = vector.broadcast %8 : vector<1x128xf32> to vector<32x128xf32>
    %10 = arith.addf %5, %9 : vector<32x128xf32>
    %cst_6 = arith.constant 0.000000e+00 : f32
    %11 = vector.broadcast %cst_6 : f32 to vector<32x128xf32>
    %12 = arith.maximumf %10, %11 : vector<32x128xf32>
    %c0_7 = arith.constant 0 : index
    %c0_8 = arith.constant 0 : index
    %c0_9 = arith.constant 0 : index
    %13 = vector.load %arg8[%c0_7, %c0_8, %c0_9] : memref<1x32x128xf32, #tpu.memory_space<vmem>>, vector<1x32x128xf32>
    %14 = vector.shape_cast %13 : vector<1x32x128xf32> to vector<32x128xf32>
    %15 = vector.shape_cast %12 : vector<32x128xf32> to vector<1x32x128xf32>
    tpu.vector_store %arg8[%c0_7, %c0_8, %c0_9], %15 {strides = array<i32>} : memref<1x32x128xf32, #tpu.memory_space<vmem>>, vector<1x32x128xf32>,
    return
  }
  func.func @transform_0(%arg0: i32, %arg1: i32, %arg2: i32) -> (i32, i32, i32, i32) {
    %c0_i32 = arith.constant 0 : i32
    %c0_i32_0 = arith.constant 0 : i32
    %c0_i32_1 = arith.constant 0 : i32
    %c0_i32_2 = arith.constant 0 : i32
    return %arg0, %c0_i32, %c0_i32_0, %c0_i32_1 : i32, i32, i32, i32
  }
  func.func @transform_1(%arg0: i32, %arg1: i32, %arg2: i32) -> (i32, i32, i32) {
    %c0_i32 = arith.constant 0 : i32
    %c0_i32_0 = arith.constant 0 : i32
    %c0_i32_1 = arith.constant 0 : i32
    %c0_i32_2 = arith.constant 0 : i32
    return %c0_i32, %c0_i32_0, %c0_i32_1 : i32, i32, i32
  }
  func.func @transform_2(%arg0: i32, %arg1: i32, %arg2: i32) -> (i32, i32) {
    %c0_i32 = arith.constant 0 : i32
    %c0_i32_0 = arith.constant 0 : i32
    %c0_i32_1 = arith.constant 0 : i32
    return %c0_i32, %c0_i32_0 : i32, i32
  }
  func.func @transform_3(%arg0: i32, %arg1: i32, %arg2: i32) -> (i32, i32) {
    %c0_i32 = arith.constant 0 : i32
    %c0_i32_0 = arith.constant 0 : i32
    return %c0_i32, %arg2 : i32, i32
  }
  func.func @transform_4(%arg0: i32, %arg1: i32, %arg2: i32) -> (i32, i32) {
    %c0_i32 = arith.constant 0 : i32
    %c0_i32_0 = arith.constant 0 : i32
    return %c0_i32, %arg2 : i32, i32
  }
  func.func @transform_5(%arg0: i32, %arg1: i32, %arg2: i32) -> (i32, i32, i32) {
    %c0_i32 = arith.constant 0 : i32
    return %arg0, %arg1, %arg2 : i32, i32, i32
  }
}

</mosaic_0001>

<bundles_post_ra>
// kernel: _block_forward_impl.1
= control target key start
LH: loop header
LB: loop body
LE: loop exit
PB: predicated region body
PF: predicated region fallthrough
CT: control target
= control target key end

     0   :  { %s1155_s18 = smov 0   ;;  %s1157_s19 = smov 0   ;;  %s1446_s0 = inlined_call_operand.vmem [shape: f32[2,18,9,256], index: 0, kind: input, shape index: {}]   ;;  %s1447_s1 = inlined_call_operand.vmem [shape: f32[3,3,128], index: 1, kind: input, shape index: {}]   ;;  %s1448_s2 = inlined_call_operand.vmem [shape: f32[1,128], index: 2, kind: input, shape index: {}]   ;;  %s1449_s3 = inlined_call_operand.vmem [shape: f32[128,128], index: 3, kind: input, shape index: {}]   ;;  %s1450_s4 = inlined_call_operand.vmem [shape: f32[1,128], index: 4, kind: input, shape index: {}]   ;;  %s1451_s5 = inlined_call_operand.vmem [shape: f32[2,64,128], index: 5, kind: output, shape index: {}]  }
   0x1   :  { %s1159_s20 = smov 0   ;;  %s1161_s21 = smov 0  }
   0x2   :  { %s1163_s22 = smov 0  }
   0x3 LB: > { %s30_s23 = sadd.s32 1, %s1115_s20  ;;  %s34_s24 = sadd.s32 1, %s1119_s21  ;;  %s1123_s22 = sphi %s1163_s22, %s15_s22   ;;  %s1119_s21 = sphi %s1161_s21, %s1455_s21   ;;  %s1115_s20 = sphi %s1159_s20, %s1454_s20   ;;  %s1111_s19 = sphi %s1157_s19, %s1453_s19   ;;  %s1107_s18 = sphi %s1155_s18, %s1452_s18  }
   0x4   : > { %p32_p0 = scmp.ge.s32.totalorder %s30_s23, 2  ;;  %p854_p1 = scmp.ge.s32.totalorder %s1123_s22, 1 }
   0x5   : > { %p227_p2 = scmp.lt.s32.totalorder %s1123_s22, 5 }
   0x6   : > { %s1457_s23 = smov (%p32_p0, %s30_s23), 0  ;;  %s1459_s24 = smov (!%p32_p0, %s34_s24), %s1119_s21 }
   0x7   : > { %p228_p3 = pnand %p854_p1, %p227_p2  ;;  %p36_p4 = scmp.ge.s32.totalorder %s1459_s24, 2 }
   0x8   : > { %p269_p5 = scmp.lt.s32.totalorder (!%p228_p3), %s1111_s19, 1  ;;  %s949_s9 = sshll.u32 (!%p228_p3), %s1107_s18, 8 }
   0x9   : > { %s1461_s24 = smov (%p36_p4, %s1459_s24), 0  ;;  %231 = sbr.rel (%p228_p3) target bundleno = 200 (0xc8), region = 40 }
   0xe   : > { %v648_v0 = vld [vmem:[%s1449_s3 + $0x78] sm:$0xff]  ;;  %v647_v1 = vld [vmem:[%s1449_s3 + $0x70] sm:$0xff]  ;;  %v646_v2 = vld [vmem:[%s1449_s3 + $0x68] sm:$0xff]  ;;  %s1463_s19 = smov (!%p269_p5, %s1111_s19), 1  ;;  %vm321_vm0 = vcmask 1046528  }
   0xf   : > { %959 = vmatpush.msra.mxu2 %v648_v0  ;;  %960 = vmatpush.msra.mxu3 %v648_v0  ;;  %v645_v3 = vld [vmem:[%s1449_s3 + $0x60] sm:$0xff]  ;;  %s1006_s8 = smul.u32 576, %s1463_s19  ;;  %v644_v4 = vld [vmem:[%s1449_s3 + $0x58] sm:$0xff]  ;;  %v643_v5 = vld [vmem:[%s1449_s3 + $0x50] sm:$0xff] }
  0x10   : > { %653 = vmatpush.msra.mxu0 %v648_v0  ;;  %958 = vmatpush.msra.mxu1 %v648_v0  ;;  %v1048_v6 = vld [vmem:[%s1447_s1] ss:$0 sm:$0xff]  ;;  %v1049_v7 = vld [vmem:[%s1447_s1 + $0x1] ss:$0 sm:$0xff]  ;;  %v1050_v8 = vld [vmem:[%s1447_s1 + $0x2] ss:$0 sm:$0xff] }
  0x11   : > { %962 = vmatpush.msra.mxu2 %v647_v1  ;;  %963 = vmatpush.msra.mxu3 %v647_v1  ;;  %s273_s16 = scalar_lea.vmem %s1446_s0, %s1006_s8  ;;  %v642_v12 = vld [vmem:[%s1449_s3 + $0x48] sm:$0xff]  ;;  %v641_v17 = vld [vmem:[%s1449_s3 + $0x40] sm:$0xff]  ;;  %v640_v26 = vld [vmem:[%s1449_s3 + $0x38] sm:$0xff]  ;;  %s856_s8 = sshll.u32 %s1107_s18, 2 }
  0x12   : > { %654 = vmatpush.msra.mxu0 %v647_v1  ;;  %961 = vmatpush.msra.mxu1 %v647_v1  ;;  %s1215_s26 = scalar_lea.vmem %s273_s16, %s949_s9  ;;  %v1051_v20 = vld [vmem:[%s1447_s1 + $0x4] ss:$0 sm:$0xff]  ;;  %v1052_v24 = vld [vmem:[%s1447_s1 + $0x5] ss:$0 sm:$0xff]  ;;  %v1053_v30 = vld [vmem:[%s1447_s1 + $0x6] ss:$0 sm:$0xff] }
  0x13   : > { %965 = vmatpush.msra.mxu2 %v646_v2  ;;  %966 = vmatpush.msra.mxu3 %v646_v2  ;;  %v1224_v9 = vld [vmem:[%s1215_s26 + $0x80] sm:$0xff]  ;;  %v1227_v10 = vld [vmem:[%s1215_s26 + $0x88] sm:$0xff]  ;;  %v905_v15 = vld [vmem:[%s1215_s26 + $0x90] sm:$0x1]  ;;  %p284_p6 = scmp.lt.s32.totalorder %s856_s8, 7  ;;  %s857_s9 = sshll.u32 %s1463_s19, 3 }
  0x14   : > { %655 = vmatpush.msra.mxu0 %v646_v2  ;;  %964 = vmatpush.msra.mxu1 %v646_v2  ;;  %v904_v11 = vld [vmem:[%s1215_s26 + $0x80] sm:$0xfe]  ;;  %v472_v13 = vmul.f32 %v1048_v6, %v1224_v9  ;;  %v477_v14 = vmul.f32 %v1049_v7, %v1227_v10  ;;  %v484_v18 = vmul.f32 %v1050_v8, %v905_v15  ;;  %v910_v23 = vld [vmem:[%s1215_s26 + $0xa8] sm:$0xff]  ;;  %v913_v28 = vld [vmem:[%s1215_s26 + $0xb0] sm:$0x1] }
  0x15   : > { %968 = vmatpush.msra.mxu2 %v645_v3  ;;  %969 = vmatpush.msra.mxu3 %v645_v3  ;;  %v483_v16 = vmul.f32 %v1050_v8, %v904_v11  ;;  %v908_v19 = vld [vmem:[%s1215_s26 + $0xa0] sm:$0xff]  ;;  %v639_v32 = vld [vmem:[%s1449_s3 + $0x30] sm:$0xff]  ;;  %v504_v34 = vmul.f32 %v1052_v24, %v910_v23  ;;  %v1054_v35 = vld [vmem:[%s1447_s1 + $0x8] ss:$0 sm:$0xff]  ;;  %v511_v40 = vmul.f32 %v1053_v30, %v913_v28  ;;  %s1465_s8 = smov (!%p284_p6, %s856_s8), 7 }
  0x16   : > { %656 = vmatpush.msra.mxu0 %v645_v3  ;;  %967 = vmatpush.msra.mxu1 %v645_v3  ;;  %v478_v21 = vadd.f32 %v477_v14, %v472_v13  ;;  %v912_v25 = vld [vmem:[%s1215_s26 + $0xa0] sm:$0xfe]  ;;  %v488_v27 = vrot.slane %v484_v18, 1  ;;  %v499_v29 = vmul.f32 %v1051_v20, %v908_v19  ;;  %v919_v36 = vld [vmem:[%s1215_s26 + $0xc8] sm:$0xff]  ;;  %v922_v42 = vld [vmem:[%s1215_s26 + $0xd0] sm:$0x1]  ;;  %s290_s10 = sadd.s32 %s857_s9, %s1465_s8 }
  0x17   : > { %971 = vmatpush.msra.mxu2 %v644_v4  ;;  %972 = vmatpush.msra.mxu3 %v644_v4  ;;  %v487_v22 = vrot.slane %v483_v16, 1  ;;  %v917_v31 = vld [vmem:[%s1215_s26 + $0xc0] sm:$0xff]  ;;  %v510_v39 = vmul.f32 %v1053_v30, %v912_v25  ;;  %v1055_v41 = vld [vmem:[%s1447_s1 + $0x9] ss:$0 sm:$0xff]  ;;  %v1056_v43 = vld [vmem:[%s1447_s1 + $0xa] ss:$0 sm:$0xff] }
  0x18   : > { %657 = vmatpush.msra.mxu0 %v644_v4  ;;  %970 = vmatpush.msra.mxu1 %v644_v4  ;;  %v921_v37 = vld [vmem:[%s1215_s26 + $0xc0] sm:$0xfe]  ;;  %v638_v44 = vld [vmem:[%s1449_s3 + $0x28] sm:$0xff]  ;;  %v1057_v45 = vld [vmem:[%s1447_s1] ss:$0 sm:$0xff]  ;;  %v515_v48 = vrot.slane %v511_v40, 1  ;;  %v526_v52 = vmul.f32 %v1054_v35, %v917_v31  ;;  %v538_v53 = vmul.f32 %v1056_v43, %v922_v42  ;;  %v531_v6 = vmul.f32 %v1055_v41, %v919_v36 }
  0x19   : > { %974 = vmatpush.msra.mxu2 %v643_v5  ;;  %975 = vmatpush.msra.mxu3 %v643_v5  ;;  %v489_v33 = vsel %vm321_vm0, %v487_v22, %v488_v27  ;;  %v514_v47 = vrot.slane %v510_v39, 1  ;;  %v537_v49 = vmul.f32 %v1056_v43, %v921_v37  ;;  %v1058_v50 = vld [vmem:[%s1447_s1 + $0x1] ss:$0 sm:$0xff]  ;;  %v552_v54 = vmul.f32 %v1057_v45, %v917_v31  ;;  %v927_v55 = vld [vmem:[%s1215_s26 + $0xd0] sm:$0x1]  ;;  %v636_v63 = vld [vmem:[%s1449_s3 + $0x18] sm:$0xff] }
  0x1a   : > { %658 = vmatpush.msra.mxu0 %v643_v5  ;;  %973 = vmatpush.msra.mxu1 %v643_v5  ;;  %v491_v38 = vadd.f32 %v489_v33, %v478_v21  ;;  %v926_v51 = vld [vmem:[%s1215_s26 + $0xc0] sm:$0xfe]  ;;  %v557_v61 = vmul.f32 %v1058_v50, %v919_v36  ;;  %v542_v0 = vrot.slane %v538_v53, 1  ;;  %v935_v11 = vld [vmem:[%s1215_s26 + $0xf0] sm:$0x1]  ;;  %v932_v15 = vld [vmem:[%s1215_s26 + $0xe8] sm:$0xff] }
  0x1b   : > { %977 = vmatpush.msra.mxu2 %v642_v12  ;;  %978 = vmatpush.msra.mxu3 %v642_v12  ;;  %v1059_v56 = vld [vmem:[%s1447_s1 + $0x2] ss:$0 sm:$0xff]  ;;  %v516_v59 = vsel %vm321_vm0, %v514_v47, %v515_v48  ;;  %v541_v60 = vrot.slane %v537_v49, 1  ;;  %v1060_v62 = vld [vmem:[%s1447_s1 + $0x4] ss:$0 sm:$0xff]  ;;  %v634_v22 = vld [vmem:[%s1449_s3 + $0x8] sm:$0xff] }
  0x1c   : > { %659 = vmatpush.msra.mxu0 %v642_v12  ;;  %976 = vmatpush.msra.mxu1 %v642_v12  ;;  %v500_v46 = vadd.f32 %v499_v29, %v491_v38  ;;  %v637_v57 = vld [vmem:[%s1449_s3 + $0x20] sm:$0xff]  ;;  %v563_v1 = vmul.f32 %v1059_v56, %v926_v51  ;;  %v564_v2 = vmul.f32 %v1059_v56, %v927_v55  ;;  %v635_v12 = vld [vmem:[%s1449_s3 + $0x10] sm:$0xff]  ;;  %v1063_v21 = vld [vmem:[%s1447_s1 + $0x8] ss:$0 sm:$0xff]  ;;  %s858_s13 = sshll.u32 %s290_s10, 3 }
  0x1d   : > { %980 = vmatpush.msra.mxu2 %v641_v17  ;;  %981 = vmatpush.msra.mxu3 %v641_v17  ;;  %v930_v3 = vld [vmem:[%s1215_s26 + $0xe0] sm:$0xff]  ;;  %v558_v7 = vadd.f32 %v557_v61, %v552_v54  ;;  %v543_v19 = vsel %vm321_vm0, %v541_v60, %v542_v0  ;;  %v944_v28 = vld [vmem:[%s1215_s26 + $0x110] sm:$0x1]  ;;  %v1065_v33 = vld [vmem:[%s1447_s1 + $0xa] ss:$0 sm:$0xff]  ;;  %s292_s16 = scalar_lea.vmem %s1451_s5, %s858_s13 }
  0x1e   : > { %660 = vmatpush.msra.mxu0 %v641_v17  ;;  %979 = vmatpush.msra.mxu1 %v641_v17  ;;  %v505_v58 = vadd.f32 %v504_v34, %v500_v46  ;;  %v1061_v4 = vld [vmem:[%s1447_s1 + $0x5] ss:$0 sm:$0xff]  ;;  %v567_v13 = vrot.slane %v563_v1, 1  ;;  %v568_v14 = vrot.slane %v564_v2, 1  ;;  %v1062_v16 = vld [vmem:[%s1447_s1 + $0x6] ss:$0 sm:$0xff]  ;;  %v579_v20 = vmul.f32 %v1060_v62, %v930_v3 }
  0x1f   : > { %983 = vmatpush.msra.mxu2 %v640_v26  ;;  %984 = vmatpush.msra.mxu3 %v640_v26  ;;  %v934_v8 = vld [vmem:[%s1215_s26 + $0xe0] sm:$0xfe]  ;;  %v1320_v23 = vld [vmem:[%s1448_s2] ss:$0 sm:$0xff]  ;;  %v584_v31 = vmul.f32 %v1061_v4, %v932_v15  ;;  %v308_v43 = vld [vmem:[%s1215_s26 + $0x8] sm:$0xff]  ;;  %v618_v47 = vmul.f32 %v1065_v33, %v944_v28 }
  0x20   : > { %661 = vmatpush.msra.mxu0 %v640_v26  ;;  %982 = vmatpush.msra.mxu1 %v640_v26  ;;  %v518_v5 = vadd.f32 %v516_v59, %v505_v58  ;;  %v939_v17 = vld [vmem:[%s1215_s26 + $0x100] sm:$0xff]  ;;  %v569_v24 = vsel %vm321_vm0, %v567_v13, %v568_v14  ;;  %v590_v25 = vmul.f32 %v1062_v16, %v934_v8  ;;  %v941_v46 = vld [vmem:[%s1215_s26 + $0x108] sm:$0xff]  ;;  %v314_v53 = vld [vmem:[%s1215_s26 + $0x10] sm:$0x1] }
  0x21   : > { %986 = vmatpush.msra.mxu2 %v639_v32  ;;  %987 = vmatpush.msra.mxu3 %v639_v32  ;;  %v591_v26 = vmul.f32 %v1062_v16, %v935_v11  ;;  %v943_v27 = vld [vmem:[%s1215_s26 + $0x100] sm:$0xfe]  ;;  %v571_v30 = vadd.f32 %v569_v24, %v558_v7  ;;  %v606_v38 = vmul.f32 %v1063_v21, %v939_v17  ;;  %v1066_v39 = vld [vmem:[%s1447_s1] ss:$0 sm:$0xff]  ;;  %v622_v56 = vrot.slane %v618_v47, 1  ;;  %v875_v16 = vld [vmem:[%s1215_s26 + $0x48] sm:$0xff] }
  0x22   : > { %662 = vmatpush.msra.mxu0 %v639_v32  ;;  %985 = vmatpush.msra.mxu1 %v639_v32  ;;  %v527_v18 = vadd.f32 %v526_v52, %v518_v5  ;;  %v1064_v32 = vld [vmem:[%s1447_s1 + $0x9] ss:$0 sm:$0xff]  ;;  %v303_v34 = vld [vmem:[%s1215_s26] sm:$0xff]  ;;  %v594_v36 = vrot.slane %v590_v25, 1  ;;  %v617_v42 = vmul.f32 %v1065_v33, %v943_v27  ;;  %v869_v1 = vld [vmem:[%s1215_s26 + $0x30] sm:$0x1] }
  0x23   : > { %989 = vmatpush.msra.mxu2 %v638_v44  ;;  %990 = vmatpush.msra.mxu3 %v638_v44  ;;  %v633_v35 = vld [vmem:[%s1449_s3] sm:$0xff]  ;;  %v595_v37 = vrot.slane %v591_v26, 1  ;;  %v580_v41 = vadd.f32 %v579_v20, %v571_v30  ;;  %v306_v48 = vmul.f32 %v1066_v39, %v303_v34  ;;  %v611_v59 = vmul.f32 %v1064_v32, %v941_v46  ;;  %v1072_v15 = vld [vmem:[%s1447_s1 + $0x8] ss:$0 sm:$0xff]  ;;  %v878_v20 = vld [vmem:[%s1215_s26 + $0x50] sm:$0x1] }
  0x24   : > { %663 = vmatpush.msra.mxu0 %v638_v44  ;;  %988 = vmatpush.msra.mxu1 %v638_v44  ;;  %v532_v29 = vadd.f32 %v531_v6, %v527_v18  ;;  %v1067_v44 = vld [vmem:[%s1447_s1 + $0x1] ss:$0 sm:$0xff]  ;;  %v1068_v54 = vld [vmem:[%s1447_s1 + $0x2] ss:$0 sm:$0xff]  ;;  %v621_v55 = vrot.slane %v617_v42, 1  ;;  %v866_v6 = vld [vmem:[%s1215_s26 + $0x28] sm:$0xff] }
  0x25   : > { %992 = vmatpush.msra.mxu2 %v637_v57  ;;  %993 = vmatpush.msra.mxu3 %v637_v57  ;;  %v596_v45 = vsel %vm321_vm0, %v594_v36, %v595_v37  ;;  %v313_v49 = vld [vmem:[%s1215_s26] sm:$0xfe]  ;;  %v585_v51 = vadd.f32 %v584_v31, %v580_v41  ;;  %v311_v52 = vmul.f32 %v1067_v44, %v308_v43  ;;  %v1074_v25 = vld [vmem:[%s1447_s1 + $0xa] ss:$0 sm:$0xff]  ;;  %v1073_v31 = vld [vmem:[%s1447_s1 + $0x9] ss:$0 sm:$0xff] }
  0x26   : > { %664 = vmatpush.msra.mxu0 %v637_v57  ;;  %991 = vmatpush.msra.mxu1 %v637_v57  ;;  %v545_v40 = vadd.f32 %v543_v19, %v532_v29  ;;  %v317_v60 = vmul.f32 %v1068_v54, %v313_v49  ;;  %v864_v61 = vld [vmem:[%s1215_s26 + $0x20] sm:$0xff]  ;;  %v318_v0 = vmul.f32 %v1068_v54, %v314_v53  ;;  %v883_v39 = vld [vmem:[%s1215_s26 + $0x50] sm:$0x1] }
  0x27   : > { %995 = vmatpush.msra.mxu2 %v636_v63  ;;  %996 = vmatpush.msra.mxu3 %v636_v63  ;;  %v598_v58 = vadd.f32 %v596_v45, %v585_v51  ;;  %v1069_v62 = vld [vmem:[%s1447_s1 + $0x4] ss:$0 sm:$0xff]  ;;  %v1071_v2 = vld [vmem:[%s1447_s1 + $0x6] ss:$0 sm:$0xff]  ;;  %v312_v4 = vadd.f32 %v311_v52, %v306_v48  ;;  %v1070_v7 = vld [vmem:[%s1447_s1 + $0x5] ss:$0 sm:$0xff]  ;;  %v623_v8 = vsel %vm321_vm0, %v621_v55, %v622_v56 }
  0x28   : > { %665 = vmatpush.msra.mxu0 %v636_v63  ;;  %994 = vmatpush.msra.mxu1 %v636_v63  ;;  %v546_v50 = vadd.f32 %v1320_v23, %v545_v40  ;;  %v868_v63 = vld [vmem:[%s1215_s26 + $0x20] sm:$0xfe]  ;;  %v322_v5 = vrot.slane %v317_v60, 1  ;;  %v323_v11 = vrot.slane %v318_v0, 1  ;;  %v347_v13 = vmul.f32 %v1071_v2, %v869_v1  ;;  %v1075_v29 = vld [vmem:[%s1447_s1] ss:$0 sm:$0xff] }
  0x29   : > { %998 = vmatpush.msra.mxu2 %v635_v12  ;;  %999 = vmatpush.msra.mxu3 %v635_v12  ;;  %v607_v3 = vadd.f32 %v606_v38, %v598_v58  ;;  %v873_v14 = vld [vmem:[%s1215_s26 + $0x40] sm:$0xff]  ;;  %v335_v18 = vmul.f32 %v1069_v62, %v864_v61  ;;  %v340_v28 = vmul.f32 %v1070_v7, %v866_v6  ;;  %v891_v52 = vld [vmem:[%s1215_s26 + $0x70] sm:$0x1]  ;;  %v888_v60 = vld [vmem:[%s1215_s26 + $0x68] sm:$0xff] }
  0x2a   : > { %666 = vmatpush.msra.mxu0 %v635_v12  ;;  %997 = vmatpush.msra.mxu1 %v635_v12  ;;  %v547_v57 = vmax.f32 %v546_v50, 0.0  ;;  %v346_v12 = vmul.f32 %v1071_v2, %v868_v63  ;;  %v877_v19 = vld [vmem:[%s1215_s26 + $0x40] sm:$0xfe]  ;;  %v324_v21 = vsel %vm321_vm0, %v322_v5, %v323_v11  ;;  %v351_v24 = vrot.slane %v347_v13, 1  ;;  %v900_v2 = vld [vmem:[%s1215_s26 + $0x90] sm:$0x1] }
  0x2b   : > { %1001 = vmatpush.msra.mxu2 %v634_v22  ;;  %1002 = vmatpush.msra.mxu3 %v634_v22  ;;  %v612_v17 = vadd.f32 %v611_v59, %v607_v3  ;;  %v326_v27 = vadd.f32 %v324_v21, %v312_v4  ;;  %v1076_v30 = vld [vmem:[%s1447_s1 + $0x1] ss:$0 sm:$0xff]  ;;  %v374_v32 = vmul.f32 %v1074_v25, %v877_v19  ;;  %v1077_v40 = vld [vmem:[%s1447_s1 + $0x2] ss:$0 sm:$0xff]  ;;  %v1078_v49 = vld [vmem:[%s1447_s1 + $0x4] ss:$0 sm:$0xff] }
  0x2c   : > { %667 = vmatpush.msra.mxu0 %v634_v22  ;;  %1000 = vmatpush.msra.mxu1 %v634_v22  ;;  %v350_v22 = vrot.slane %v346_v12, 1  ;;  %v375_v33 = vmul.f32 %v1074_v25, %v878_v20  ;;  %v882_v34 = vld [vmem:[%s1215_s26 + $0x40] sm:$0xfe]  ;;  %v392_v37 = vmul.f32 %v1075_v29, %v873_v14  ;;  %v397_v38 = vmul.f32 %v1076_v30, %v875_v16  ;;  %v1083_v7 = vld [vmem:[%s1447_s1 + $0xa] ss:$0 sm:$0xff] }
  0x2d   : > { %1004 = vmatpush.msra.mxu2 %v633_v35  ;;  %1005 = vmatpush.msra.mxu3 %v633_v35  ;;  %v625_v26 = vadd.f32 %v623_v8, %v612_v17  ;;  %v336_v36 = vadd.f32 %v335_v18, %v326_v27  ;;  %v363_v42 = vmul.f32 %v1072_v15, %v873_v14  ;;  %v378_v43 = vrot.slane %v374_v32, 1  ;;  %v886_v44 = vld [vmem:[%s1215_s26 + $0x60] sm:$0xff]  ;;  %v1081_v13 = vld [vmem:[%s1447_s1 + $0x8] ss:$0 sm:$0xff]  ;;  %v1082_v18 = vld [vmem:[%s1447_s1 + $0x9] ss:$0 sm:$0xff] }
  0x2e   : > { %668 = vmatpush.msra.mxu0 %v633_v35  ;;  %1003 = vmatpush.msra.mxu1 %v633_v35  ;;  %v352_v41 = vsel %vm321_vm0, %v350_v22, %v351_v24  ;;  %v379_v47 = vrot.slane %v375_v33, 1  ;;  %v403_v48 = vmul.f32 %v1077_v40, %v882_v34  ;;  %v890_v50 = vld [vmem:[%s1215_s26 + $0x60] sm:$0xfe]  ;;  %v404_v51 = vmul.f32 %v1077_v40, %v883_v39 }
  0x2f   : > { %675 = vmatmul.f32.vlgmr.msra.gmra.mxu2 %v547_v57  ;;  %v626_v35 = vadd.f32 %v1320_v23, %v625_v26  ;;  %v341_v46 = vadd.f32 %v340_v28, %v336_v36  ;;  %v1080_v53 = vld [vmem:[%s1447_s1 + $0x6] ss:$0 sm:$0xff]  ;;  %v368_v55 = vmul.f32 %v1073_v31, %v875_v16  ;;  %v398_v56 = vadd.f32 %v397_v38, %v392_v37  ;;  %v1079_v58 = vld [vmem:[%s1447_s1 + $0x5] ss:$0 sm:$0xff] }
  0x30   : > { %v407_v57 = vrot.slane %v403_v48, 1  ;;  %v408_v59 = vrot.slane %v404_v51, 1  ;;  %v430_v61 = vmul.f32 %v1080_v53, %v890_v50  ;;  %v431_v62 = vmul.f32 %v1080_v53, %v891_v52  ;;  %v899_v1 = vld [vmem:[%s1215_s26 + $0x80] sm:$0xfe] }
  0x31   : > { %v627_v45 = vmax.f32 %v626_v35, 0.0  ;;  %v354_v54 = vadd.f32 %v352_v41, %v341_v46  ;;  %v419_v0 = vmul.f32 %v1078_v49, %v886_v44  ;;  %v380_v3 = vsel %vm321_vm0, %v378_v43, %v379_v47 }
  0x32   : > { %v409_v4 = vsel %vm321_vm0, %v407_v57, %v408_v59  ;;  %v434_v5 = vrot.slane %v430_v61, 1  ;;  %v435_v6 = vrot.slane %v431_v62, 1  ;;  %v424_v12 = vmul.f32 %v1079_v58, %v888_v60 }
  0x33   : > { %678 = vmatmul.f32.vlgmr.msra.gmra.mxu3 %v627_v45  ;;  %v364_v63 = vadd.f32 %v363_v42, %v354_v54  ;;  %v411_v11 = vadd.f32 %v409_v4, %v398_v56  ;;  %v457_v14 = vmul.f32 %v1083_v7, %v899_v1  ;;  %v458_v15 = vmul.f32 %v1083_v7, %v900_v2 }
  0x34   : > { %v436_v19 = vsel %vm321_vm0, %v434_v5, %v435_v6  ;;  %v446_v22 = vmul.f32 %v1081_v13, %v1224_v9  ;;  %v451_v28 = vmul.f32 %v1082_v18, %v1227_v10  ;;  %v1084_v9 = vld [vmem:[%s1450_s4] ss:$0 sm:$0xff] }
  0x35   : > { %v369_v8 = vadd.f32 %v368_v55, %v364_v63  ;;  %v420_v17 = vadd.f32 %v419_v0, %v411_v11  ;;  %v461_v24 = vrot.slane %v457_v14, 1  ;;  %v462_v25 = vrot.slane %v458_v15, 1 }
  0x37   : > { %v382_v16 = vadd.f32 %v380_v3, %v369_v8  ;;  %v425_v21 = vadd.f32 %v424_v12, %v420_v17  ;;  %v463_v30 = vsel %vm321_vm0, %v461_v24, %v462_v25 }
  0x39   : > { %v386_v20 = vadd.f32 %v1320_v23, %v382_v16  ;;  %v438_v27 = vadd.f32 %v436_v19, %v425_v21 }
  0x3b   : > { %v387_v26 = vmax.f32 %v386_v20, 0.0  ;;  %v447_v29 = vadd.f32 %v446_v22, %v438_v27 }
  0x3d   : > { %669 = vmatmul.f32.vlgmr.msra.gmra.mxu0 %v387_v26  ;;  %v452_v31 = vadd.f32 %v451_v28, %v447_v29 }
  0x3f   : > { %v465_v32 = vadd.f32 %v463_v30, %v452_v31 }
  0x41   : > { %v466_v33 = vadd.f32 %v1320_v23, %v465_v32 }
  0x43   : > { %v467_v34 = vmax.f32 %v466_v33, 0.0 }
  0x45   : > { %672 = vmatmul.f32.vlgmr.msra.gmra.mxu1 %v467_v34 }
  0xb2   : > { %v676_v10 = vpop.f32.mrf.mxu2 }
  0xb3   : > { %v677_v35 = vadd.f32 %v1084_v9, %v676_v10 }
  0xb5   : > { %v684_v36 = vmax.f32 %v677_v35, 0.0 }
  0xb6   : > { %v679_v23 = vpop.f32.mrf.mxu3 }
  0xb7   : > { %688 = vst [vmem:[%s292_s16 + $0x10] sm:$0xff] %v684_v36  ;;  %v680_v37 = vadd.f32 %v1084_v9, %v679_v23 }
  0xb9   : > { %v685_v38 = vmax.f32 %v680_v37, 0.0 }
  0xba   : > { %v670_v39 = vpop.f32.mrf.mxu0 }
  0xbb   : > { %689 = vst [vmem:[%s292_s16 + $0x18] sm:$0xff] %v685_v38  ;;  %v671_v40 = vadd.f32 %v1084_v9, %v670_v39 }
  0xbd   : > { %v682_v41 = vmax.f32 %v671_v40, 0.0 }
  0xbf   : > { %686 = vst [vmem:[%s292_s16] sm:$0xff] %v682_v41 }
  0xc2   : > { %v673_v42 = vpop.f32.mrf.mxu1 }
  0xc3   : > { %v674_v43 = vadd.f32 %v1084_v9, %v673_v42 }
  0xc5   : > { %v683_v44 = vmax.f32 %v674_v43, 0.0 }
  0xc7   : > { %687 = vst [vmem:[%s292_s16 + $0x8] sm:$0xff] %v683_v44 }
  0xc8 PF: > { %s15_s22 = sadd.s32 1, %s1123_s22   ;;  %s1452_s18 = smov %s1115_s20 }
  0xc9   : > { %p12_p7 = scmp.ge.s32.totalorder %s15_s22, 6   ;;  %s1453_s19 = smov %s1119_s21 }
  0xca   : > { %s1454_s20 = smov %s1457_s23  ;;  %s1455_s21 = smov %s1461_s24 }
  0xcb   :  { %14 = sbr.rel (!%p12_p7) target bundleno = 3 (0x3), region = 91 }

</bundles_post_ra>
